<compile_context>
chip_gen: v7x
topology: tpu7x:2x2x1
jax: 0.10.0
libtpu: 0.0.40
codegen_flags: <defaults>
</compile_context>

<pallas_src>
import jax
import jax.numpy as jnp
from jax import lax
from jax.experimental import pallas as pl
from jax.experimental.pallas import tpu as pltpu

N_EMBD = 128
N_HEADS = 8
HEAD_SIZE = N_EMBD // N_HEADS          # 16
NUM_DIGITS = 10
MAX_LEN = NUM_DIGITS * 2 + (NUM_DIGITS + 1)   # 31 -> causal mask covers T <= 30
LN_EPS = 1e-5


def _layer_norm(x, g, b):
    mu = jnp.mean(x, axis=-1, keepdims=True)
    var = jnp.mean((x - mu) ** 2, axis=-1, keepdims=True)
    return (x - mu) * lax.rsqrt(var + LN_EPS) * g + b


def block_kernel(x_ref, ln1_g_ref, ln1_b_ref, wqkv_ref, wproj_ref, bproj_ref,
                 ln2_g_ref, ln2_b_ref, w1_ref, b1_ref, w2_ref, b2_ref, o_ref):
    Bb, T, C = x_ref.shape
    H, D = N_HEADS, HEAD_SIZE
    M = Bb * T
    x = x_ref[...].reshape(M, C)                      # (M, C) f32 slab

    # ---- attention branch: ln1 -> fused QKV -> batched multi-head attn ------
    h = _layer_norm(x, ln1_g_ref[...], ln1_b_ref[...])
    qkv = jnp.dot(h.astype(jnp.bfloat16), wqkv_ref[...],
                  preferred_element_type=jnp.float32)  # (M, 3C) f32

    def to_heads(t):
        # (M, C) -> (Bb*H, T, D). Only last-two-dim transposes (supported XLU
        # form) and reshapes whose lane dim is untouched and whose sublane
        # splits are 8-aligned, so no per-head 16-lane slicing / relayouts.
        t = t.reshape(Bb, T, C)
        t = jnp.swapaxes(t, 1, 2)                      # (Bb, C, T)
        t = t.reshape(Bb * H, D, T)                    # head h -> batch b*H+h
        return jnp.swapaxes(t, 1, 2)                   # (Bb*H, T, D)

    def from_heads(t):
        # Inverse of to_heads: (Bb*H, T, D) -> (M, C) (head h -> cols h*D..).
        t = jnp.swapaxes(t, 1, 2)                      # (Bb*H, D, T)
        t = t.reshape(Bb, C, T)
        t = jnp.swapaxes(t, 1, 2)                      # (Bb, T, C)
        return t.reshape(M, C)

    # 128-lane-aligned splits of the fused QKV projection.
    q = to_heads(qkv[:, 0 * C:1 * C]).astype(jnp.bfloat16)   # (BH, T, D)
    k = to_heads(qkv[:, 1 * C:2 * C]).astype(jnp.bfloat16)
    v = to_heads(qkv[:, 2 * C:3 * C]).astype(jnp.bfloat16)

    # Causal mask & scale built once; broadcast over all Bb*H heads.
    rows = lax.broadcasted_iota(jnp.int32, (T, T), 0)
    cols = lax.broadcasted_iota(jnp.int32, (T, T), 1)
    causal = (rows >= cols)[None, :, :]               # (1, T, T)
    # NOTE: PyTorch Head scales by n_embd**-0.5 (C=128), NOT head_size**-0.5.
    # This matches the reference module -- intentional, do not "fix".
    scale = jnp.float32(C) ** -0.5

    # One batched score matmul + ONE softmax pass over (Bb*H, T, T).
    s = jnp.einsum('bqd,bkd->bqk', q, k,
                   preferred_element_type=jnp.float32) * scale
    s = jnp.where(causal, s, jnp.float32(-1e30))
    s = s - jnp.max(s, axis=-1, keepdims=True)
    p = jnp.exp(s)
    p = p * pl.reciprocal(jnp.sum(p, axis=-1, keepdims=True), approx=True)
    # TODO(synk): attn_dropout is identity in eval mode; no RNG applied.
    o = jnp.einsum('bqk,bkd->bqd', p.astype(jnp.bfloat16), v,
                   preferred_element_type=jnp.float32)          # (BH, T, D)

    # Single (M, 128) @ (128, 128) output projection (one MXU pass).
    attn = jnp.dot(from_heads(o).astype(jnp.bfloat16), wproj_ref[...],
                   preferred_element_type=jnp.float32)
    x1 = x + attn + bproj_ref[...]

    # ---- ffn branch: ln2 -> linear(4C) -> relu -> linear(C) ----
    h2 = _layer_norm(x1, ln2_g_ref[...], ln2_b_ref[...])
    f = jnp.dot(h2.astype(jnp.bfloat16), w1_ref[...],
                preferred_element_type=jnp.float32) + b1_ref[...]
    f = jnp.maximum(f, 0.0)
    f = jnp.dot(f.astype(jnp.bfloat16), w2_ref[...],
                preferred_element_type=jnp.float32) + b2_ref[...]
    # TODO(synk): ffn dropout is identity in eval mode; no RNG applied.
    o_ref[...] = (x1 + f).reshape(Bb, T, C)


_PARAM_ORDER = ("ln1_g", "ln1_b", "wqkv", "wproj", "bproj",
                "ln2_g", "ln2_b", "w1", "b1", "w2", "b2")


def _pick_block_batch(B, T, target_rows=512):
    """Largest divisor Bb of B with Bb*T <= target_rows (fills the MXU M dim),
    while keeping grid = B // Bb >= 2 whenever B >= 2 so both TensorCores are
    used on dual-core chips (v7x)."""
    best = 1
    for d in range(1, B + 1):
        if B % d == 0 and d * T <= target_rows and (B // d >= 2 or B == 1):
            best = d
    return best


def block_forward(x, params, block_batch=None, target_rows=512):
    B, T, C = x.shape

    # Pad T to a multiple of 8 so every (Bb,T,C) <-> (Bb*T,C) reshape and the
    # in-kernel head transposes are sublane-tile aligned (no per-step
    # relayout copies at e.g. T=31). Padded rows are causally inert for the
    # real rows and are sliced off afterwards.
    Tp = ((T + 7) // 8) * 8
    xp = x if Tp == T else jnp.pad(x, ((0, 0), (0, Tp - T), (0, 0)))

    Bb = block_batch if block_batch is not None else _pick_block_batch(
        B, Tp, target_rows)
    assert B % Bb == 0

    # Pack kernel-side params: fuse QKV, cast matmul weights to bf16.
    # LN params / biases stay f32 (elementwise path).
    kp = {
        "ln1_g": params["ln1_g"],
        "ln1_b": params["ln1_b"],
        "wqkv": jnp.concatenate(
            [params["wq"], params["wk"], params["wv"]], axis=1
        ).astype(jnp.bfloat16),                                    # (C, 3C)
        "wproj": params["wproj"].astype(jnp.bfloat16),             # (C, C)
        "bproj": params["bproj"],
        "ln2_g": params["ln2_g"],
        "ln2_b": params["ln2_b"],
        "w1": params["w1"].astype(jnp.bfloat16),
        "b1": params["b1"],
        "w2": params["w2"].astype(jnp.bfloat16),
        "b2": params["b2"],
    }

    in_specs = [pl.BlockSpec((Bb, Tp, C), lambda b: (b, 0, 0))]
    args = [xp]
    for name in _PARAM_ORDER:
        p = kp[name]
        nd = p.ndim
        # Constant index_map -> weights stay VMEM-resident across grid steps.
        in_specs.append(pl.BlockSpec(p.shape, lambda b, _nd=nd: (0,) * _nd))
        args.append(p)

    H, D = N_HEADS, HEAD_SIZE
    flops = int(2 * B * Tp * C * 3 * C            # fused QKV
                + 4 * B * H * Tp * Tp * D         # scores + p@v
                + 2 * B * Tp * C * C              # output projection
                + 4 * B * Tp * C * 4 * C)         # FFN (two matmuls)
    transcendentals = int(B * H * Tp * Tp + 4 * B * Tp)
    bytes_accessed = int(2 * xp.size * 4 + sum(int(p.size) * p.dtype.itemsize
                                               for p in kp.values()))

    out = pl.pallas_call(
        block_kernel,
        out_shape=jax.ShapeDtypeStruct((B, Tp, C), jnp.float32),
        grid=(B // Bb,),
        in_specs=in_specs,
        out_specs=pl.BlockSpec((Bb, Tp, C), lambda b: (b, 0, 0)),
        compiler_params=pltpu.CompilerParams(
            dimension_semantics=("parallel",)),
        cost_estimate=pl.CostEstimate(flops=flops,
                                      transcendentals=transcendentals,
                                      bytes_accessed=bytes_accessed),
    )(*args)
    return out if Tp == T else out[:, :T, :]


def init_params(key):
    ks = jax.random.split(key, 8)

    def w(k, shape, scale=0.02):
        return (scale * jax.random.normal(k, shape)).astype(jnp.float32)

    C = N_EMBD
    return {
        "ln1_g": jnp.ones((1, C), jnp.float32),
        "ln1_b": jnp.zeros((1, C), jnp.float32),
        # per-head Q/K/V Linears packed along the output axis; head h occupies
        # columns [h*HEAD_SIZE, (h+1)*HEAD_SIZE) -> matches torch.cat order.
        "wq": w(ks[0], (C, C)),
        "wk": w(ks[1], (C, C)),
        "wv": w(ks[2], (C, C)),
        "wproj": w(ks[3], (C, C)),
        "bproj": w(ks[4], (1, C)),
        "ln2_g": jnp.ones((1, C), jnp.float32),
        "ln2_b": jnp.zeros((1, C), jnp.float32),
        "w1": w(ks[5], (C, 4 * C)),
        "b1": w(ks[6], (1, 4 * C)),
        "w2": w(ks[7], (4 * C, C)),
        "b2": jnp.zeros((1, C), jnp.float32),
    }


def block_reference(x, p):
    """Pure-JAX f32 reference mirroring the PyTorch module (eval mode)."""
    def ln(t, g, b):
        mu = jnp.mean(t, axis=-1, keepdims=True)
        var = jnp.mean((t - mu) ** 2, axis=-1, keepdims=True)
        return (t - mu) / jnp.sqrt(var + LN_EPS) * g + b

    B, T, C = x.shape
    h = ln(x, p["ln1_g"], p["ln1_b"])
    q = h @ p["wq"]; k = h @ p["wk"]; v = h @ p["wv"]
    mask = jnp.tril(jnp.ones((T, T), bool))
    outs = []
    for hd in range(N_HEADS):
        sl = slice(hd * HEAD_SIZE, (hd + 1) * HEAD_SIZE)
        s = jnp.einsum("btd,bsd->bts", q[..., sl], k[..., sl]) * (C ** -0.5)
        s = jnp.where(mask, s, -jnp.inf)
        w_ = jax.nn.softmax(s, axis=-1)
        outs.append(jnp.einsum("bts,bsd->btd", w_, v[..., sl]))
    attn = jnp.concatenate(outs, axis=-1) @ p["wproj"] + p["bproj"]
    x1 = x + attn
    h2 = ln(x1, p["ln2_g"], p["ln2_b"])
    f = jnp.maximum(h2 @ p["w1"] + p["b1"], 0.0) @ p["w2"] + p["b2"]
    return x1 + f


if __name__ == "__main__":
    key = jax.random.PRNGKey(0)
    kx, kp = jax.random.split(key)
    B, T, C = 2, 8, N_EMBD          # T=8 <= max_len-1=30
    x = jax.random.normal(kx, (B, T, C), jnp.float32)
    params = init_params(kp)

    out = jax.block_until_ready(block_forward(x, params))
    ref = jax.block_until_ready(block_reference(x, params))

    assert out.shape == (B, T, C) and out.dtype == jnp.float32
    max_err = float(jnp.max(jnp.abs(out - ref)))
    # bf16 MXU matmuls vs the pure-f32 reference -> looser tolerance than 1e-4.
    assert jnp.allclose(out, ref, atol=2e-2, rtol=2e-2), max_err
    print("KERNEL_OK")
</pallas_src>

<mosaic_0001>
module attributes {stable_mosaic.version = 11 : i64} {
  func.func @block_kernel(%arg0: i32, %arg1: memref<1x8x128xf32, #tpu.memory_space<vmem>>, %arg2: memref<1x128xf32, #tpu.memory_space<vmem>>, %arg3: memref<1x128xf32, #tpu.memory_space<vmem>>, %arg4: memref<128x384xbf16, #tpu.memory_space<vmem>>, %arg5: memref<128x128xbf16, #tpu.memory_space<vmem>>, %arg6: memref<1x128xf32, #tpu.memory_space<vmem>>, %arg7: memref<1x128xf32, #tpu.memory_space<vmem>>, %arg8: memref<1x128xf32, #tpu.memory_space<vmem>>, %arg9: memref<128x512xbf16, #tpu.memory_space<vmem>>, %arg10: memref<1x512xf32, #tpu.memory_space<vmem>>, %arg11: memref<512x128xbf16, #tpu.memory_space<vmem>>, %arg12: memref<1x128xf32, #tpu.memory_space<vmem>>, %arg13: memref<1x8x128xf32, #tpu.memory_space<vmem>>) attributes {dimension_semantics = [#tpu.dimension_semantics<parallel>], iteration_bounds = array<i64: 2>, scalar_prefetch = 0 : i64, scratch_operands = 0 : i64, tpu.core_type = #tpu.core_type<tc>, window_params = [{transform_indices = @transform_0, window_bounds = array<i64: 1, 8, 128>}, {pipeline_mode = #tpu.pipeline_mode<synchronous>, transform_indices = @transform_1, window_bounds = array<i64: 1, 128>}, {pipeline_mode = #tpu.pipeline_mode<synchronous>, transform_indices = @transform_2, window_bounds = array<i64: 1, 128>}, {pipeline_mode = #tpu.pipeline_mode<synchronous>, transform_indices = @transform_3, window_bounds = array<i64: 128, 384>}, {pipeline_mode = #tpu.pipeline_mode<synchronous>, transform_indices = @transform_4, window_bounds = array<i64: 128, 128>}, {pipeline_mode = #tpu.pipeline_mode<synchronous>, transform_indices = @transform_5, window_bounds = array<i64: 1, 128>}, {pipeline_mode = #tpu.pipeline_mode<synchronous>, transform_indices = @transform_6, window_bounds = array<i64: 1, 128>}, {pipeline_mode = #tpu.pipeline_mode<synchronous>, transform_indices = @transform_7, window_bounds = array<i64: 1, 128>}, {pipeline_mode = #tpu.pipeline_mode<synchronous>, transform_indices = @transform_8, window_bounds = array<i64: 128, 512>}, {pipeline_mode = #tpu.pipeline_mode<synchronous>, transform_indices = @transform_9, window_bounds = array<i64: 1, 512>}, {pipeline_mode = #tpu.pipeline_mode<synchronous>, transform_indices = @transform_10, window_bounds = array<i64: 512, 128>}, {pipeline_mode = #tpu.pipeline_mode<synchronous>, transform_indices = @transform_11, window_bounds = array<i64: 1, 128>}, {transform_indices = @transform_12, window_bounds = array<i64: 1, 8, 128>}]} {
    %c0 = arith.constant 0 : index
    %c0_0 = arith.constant 0 : index
    %c0_1 = arith.constant 0 : index
    %0 = vector.load %arg1[%c0, %c0_0, %c0_1] : memref<1x8x128xf32, #tpu.memory_space<vmem>>, vector<1x8x128xf32>
    %1 = vector.shape_cast %0 : vector<1x8x128xf32> to vector<8x128xf32>
    %c0_2 = arith.constant 0 : index
    %c0_3 = arith.constant 0 : index
    %2 = vector.load %arg2[%c0_2, %c0_3] : memref<1x128xf32, #tpu.memory_space<vmem>>, vector<1x128xf32>
    %c0_4 = arith.constant 0 : index
    %c0_5 = arith.constant 0 : index
    %3 = vector.load %arg3[%c0_4, %c0_5] : memref<1x128xf32, #tpu.memory_space<vmem>>, vector<1x128xf32>
    %cst = arith.constant dense<0.000000e+00> : vector<8xf32>
    %4 = vector.multi_reduction <add>, %1, %cst [1] : vector<8x128xf32> to vector<8xf32>
    %5 = vector.shape_cast %4 : vector<8xf32> to vector<8x1xf32>
    %cst_6 = arith.constant 1.280000e+02 : f32
    %6 = vector.broadcast %cst_6 : f32 to vector<8x1xf32>
    %7 = arith.divf %5, %6 : vector<8x1xf32>
    %8 = vector.broadcast %7 : vector<8x1xf32> to vector<8x128xf32>
    %9 = arith.subf %1, %8 : vector<8x128xf32>
    %10 = arith.mulf %9, %9 : vector<8x128xf32>
    %cst_7 = arith.constant dense<0.000000e+00> : vector<8xf32>
    %11 = vector.multi_reduction <add>, %10, %cst_7 [1] : vector<8x128xf32> to vector<8xf32>
    %12 = vector.shape_cast %11 : vector<8xf32> to vector<8x1xf32>
    %cst_8 = arith.constant 1.280000e+02 : f32
    %13 = vector.broadcast %cst_8 : f32 to vector<8x1xf32>
    %14 = arith.divf %12, %13 : vector<8x1xf32>
    %15 = vector.broadcast %7 : vector<8x1xf32> to vector<8x128xf32>
    %16 = arith.subf %1, %15 : vector<8x128xf32>
    %cst_9 = arith.constant 9.99999974E-6 : f32
    %17 = vector.broadcast %cst_9 : f32 to vector<8x1xf32>
    %18 = arith.addf %14, %17 : vector<8x1xf32>
    %19 = math.rsqrt %18 : vector<8x1xf32>
    %20 = vector.broadcast %19 : vector<8x1xf32> to vector<8x128xf32>
    %21 = arith.mulf %16, %20 : vector<8x128xf32>
    %22 = vector.broadcast %2 : vector<1x128xf32> to vector<8x128xf32>
    %23 = arith.mulf %21, %22 : vector<8x128xf32>
    %24 = vector.broadcast %3 : vector<1x128xf32> to vector<8x128xf32>
    %25 = arith.addf %23, %24 : vector<8x128xf32>
    %26 = arith.truncf %25 : vector<8x128xf32> to vector<8x128xbf16>
    %c0_10 = arith.constant 0 : index
    %c0_11 = arith.constant 0 : index
    %27 = vector.load %arg4[%c0_10, %c0_11] : memref<128x384xbf16, #tpu.memory_space<vmem>>, vector<128x384xbf16>
    %cst_12 = arith.constant dense<0.000000e+00> : vector<8x384xf32>
    %28 = tpu.matmul %26, %27, %cst_12 {dimension_numbers = #tpu.dot_dimension_numbers<[1], [0], [0], [1], [0, 0, 1, 1], [], []>} : vector<8x128xbf16>, vector<128x384xbf16>, vector<8x384xf32> -> vector<8x384xf32>
    %29 = vector.extract_strided_slice %28 {offsets = [0, 0], sizes = [8, 128], strides = [1, 1]} : vector<8x384xf32> to vector<8x128xf32>
    %30 = vector.shape_cast %29 : vector<8x128xf32> to vector<1x8x128xf32>
    %31 = tpu.transpose %30, [0, 2, 1] : vector<1x8x128xf32> -> vector<1x128x8xf32>
    %32 = vector.shape_cast %31 : vector<1x128x8xf32> to vector<8x16x8xf32>
    %33 = tpu.transpose %32, [0, 2, 1] : vector<8x16x8xf32> -> vector<8x8x16xf32>
    %34 = arith.truncf %33 : vector<8x8x16xf32> to vector<8x8x16xbf16>
    %35 = vector.extract_strided_slice %28 {offsets = [0, 128], sizes = [8, 128], strides = [1, 1]} : vector<8x384xf32> to vector<8x128xf32>
    %36 = vector.shape_cast %35 : vector<8x128xf32> to vector<1x8x128xf32>
    %37 = tpu.transpose %36, [0, 2, 1] : vector<1x8x128xf32> -> vector<1x128x8xf32>
    %38 = vector.shape_cast %37 : vector<1x128x8xf32> to vector<8x16x8xf32>
    %39 = tpu.transpose %38, [0, 2, 1] : vector<8x16x8xf32> -> vector<8x8x16xf32>
    %40 = arith.truncf %39 : vector<8x8x16xf32> to vector<8x8x16xbf16>
    %41 = vector.extract_strided_slice %28 {offsets = [0, 256], sizes = [8, 128], strides = [1, 1]} : vector<8x384xf32> to vector<8x128xf32>
    %42 = vector.shape_cast %41 : vector<8x128xf32> to vector<1x8x128xf32>
    %43 = tpu.transpose %42, [0, 2, 1] : vector<1x8x128xf32> -> vector<1x128x8xf32>
    %44 = vector.shape_cast %43 : vector<1x128x8xf32> to vector<8x16x8xf32>
    %45 = tpu.transpose %44, [0, 2, 1] : vector<8x16x8xf32> -> vector<8x8x16xf32>
    %46 = arith.truncf %45 : vector<8x8x16xf32> to vector<8x8x16xbf16>
    %47 = tpu.iota {dimensions = array<i32: 0>} : vector<8x8xi32>
    %48 = tpu.iota {dimensions = array<i32: 1>} : vector<8x8xi32>
    %49 = arith.cmpi sge, %47, %48 : vector<8x8xi32>
    %50 = vector.shape_cast %49 : vector<8x8xi1> to vector<1x8x8xi1>
    %cst_13 = arith.constant 1.280000e+02 : f32
    %cst_14 = arith.constant -5.000000e-01 : f32
    %51 = math.powf %cst_13, %cst_14 : f32
    "tpu.trace_start"() <{level = 10 : i32, message = "bqd,bkd->bqk"}> : () -> ()
    %cst_15 = arith.constant dense<0.000000e+00> : vector<8x8x8xf32>
    %52 = tpu.matmul %34, %40, %cst_15 {dimension_numbers = #tpu.dot_dimension_numbers<[2], [2], [1], [1], [0, 0, 0, 1, 1, 1], [0], [0]>} : vector<8x8x16xbf16>, vector<8x8x16xbf16>, vector<8x8x8xf32> -> vector<8x8x8xf32>
    "tpu.trace_stop"() : () -> ()
    %53 = vector.broadcast %51 : f32 to vector<8x8x8xf32>
    %54 = arith.mulf %52, %53 : vector<8x8x8xf32>
    %cst_16 = arith.constant -1.000000e+30 : f32
    %55 = vector.shape_cast %50 : vector<1x8x8xi1> to vector<1x8x8xi1>
    %56 = vector.broadcast %55 : vector<1x8x8xi1> to vector<8x8x8xi1>
    %57 = vector.broadcast %cst_16 : f32 to vector<8x8x8xf32>
    %58 = arith.select %56, %54, %57 : vector<8x8x8xi1>, vector<8x8x8xf32>
    %cst_17 = arith.constant dense<0xFF800000> : vector<8x8xf32>
    %59 = vector.multi_reduction <maximumf>, %58, %cst_17 [2] : vector<8x8x8xf32> to vector<8x8xf32>
    %60 = vector.shape_cast %59 : vector<8x8xf32> to vector<8x8x1xf32>
    %61 = vector.broadcast %60 : vector<8x8x1xf32> to vector<8x8x8xf32>
    %62 = arith.subf %58, %61 : vector<8x8x8xf32>
    %63 = math.exp %62 : vector<8x8x8xf32>
    %cst_18 = arith.constant dense<0.000000e+00> : vector<8x8xf32>
    %64 = vector.multi_reduction <add>, %63, %cst_18 [2] : vector<8x8x8xf32> to vector<8x8xf32>
    %65 = vector.shape_cast %64 : vector<8x8xf32> to vector<8x8x1xf32>
    %66 = tpu.reciprocal %65 {approx = true} : vector<8x8x1xf32> -> vector<8x8x1xf32>
    %67 = vector.broadcast %66 : vector<8x8x1xf32> to vector<8x8x8xf32>
    %68 = arith.mulf %63, %67 : vector<8x8x8xf32>
    %69 = arith.truncf %68 : vector<8x8x8xf32> to vector<8x8x8xbf16>
    "tpu.trace_start"() <{level = 10 : i32, message = "bqk,bkd->bqd"}> : () -> ()
    %cst_19 = arith.constant dense<0.000000e+00> : vector<8x8x16xf32>
    %70 = tpu.matmul %69, %46, %cst_19 {dimension_numbers = #tpu.dot_dimension_numbers<[2], [1], [1], [2], [0, 0, 0, 1, 1, 2], [0], [0]>} : vector<8x8x8xbf16>, vector<8x8x16xbf16>, vector<8x8x16xf32> -> vector<8x8x16xf32>
    "tpu.trace_stop"() : () -> ()
    %71 = tpu.transpose %70, [0, 2, 1] : vector<8x8x16xf32> -> vector<8x16x8xf32>
    %72 = vector.shape_cast %71 : vector<8x16x8xf32> to vector<1x128x8xf32>
    %73 = tpu.transpose %72, [0, 2, 1] : vector<1x128x8xf32> -> vector<1x8x128xf32>
    %74 = vector.shape_cast %73 : vector<1x8x128xf32> to vector<8x128xf32>
    %75 = arith.truncf %74 : vector<8x128xf32> to vector<8x128xbf16>
    %c0_20 = arith.constant 0 : index
    %c0_21 = arith.constant 0 : index
    %76 = vector.load %arg5[%c0_20, %c0_21] : memref<128x128xbf16, #tpu.memory_space<vmem>>, vector<128x128xbf16>
    %cst_22 = arith.constant dense<0.000000e+00> : vector<8x128xf32>
    %77 = tpu.matmul %75, %76, %cst_22 {dimension_numbers = #tpu.dot_dimension_numbers<[1], [0], [0], [1], [0, 0, 1, 1], [], []>} : vector<8x128xbf16>, vector<128x128xbf16>, vector<8x128xf32> -> vector<8x128xf32>
    %78 = arith.addf %1, %77 : vector<8x128xf32>
    %c0_23 = arith.constant 0 : index
    %c0_24 = arith.constant 0 : index
    %79 = vector.load %arg6[%c0_23, %c0_24] : memref<1x128xf32, #tpu.memory_space<vmem>>, vector<1x128xf32>
    %80 = vector.broadcast %79 : vector<1x128xf32> to vector<8x128xf32>
    %81 = arith.addf %78, %80 : vector<8x128xf32>
    %c0_25 = arith.constant 0 : index
    %c0_26 = arith.constant 0 : index
    %82 = vector.load %arg7[%c0_25, %c0_26] : memref<1x128xf32, #tpu.memory_space<vmem>>, vector<1x128xf32>
    %c0_27 = arith.constant 0 : index
    %c0_28 = arith.constant 0 : index
    %83 = vector.load %arg8[%c0_27, %c0_28] : memref<1x128xf32, #tpu.memory_space<vmem>>, vector<1x128xf32>
    %cst_29 = arith.constant dense<0.000000e+00> : vector<8xf32>
    %84 = vector.multi_reduction <add>, %81, %cst_29 [1] : vector<8x128xf32> to vector<8xf32>
    %85 = vector.shape_cast %84 : vector<8xf32> to vector<8x1xf32>
    %cst_30 = arith.constant 1.280000e+02 : f32
    %86 = vector.broadcast %cst_30 : f32 to vector<8x1xf32>
    %87 = arith.divf %85, %86 : vector<8x1xf32>
    %88 = vector.broadcast %87 : vector<8x1xf32> to vector<8x128xf32>
    %89 = arith.subf %81, %88 : vector<8x128xf32>
    %90 = arith.mulf %89, %89 : vector<8x128xf32>
    %cst_31 = arith.constant dense<0.000000e+00> : vector<8xf32>
    %91 = vector.multi_reduction <add>, %90, %cst_31 [1] : vector<8x128xf32> to vector<8xf32>
    %92 = vector.shape_cast %91 : vector<8xf32> to vector<8x1xf32>
    %cst_32 = arith.constant 1.280000e+02 : f32
    %93 = vector.broadcast %cst_32 : f32 to vector<8x1xf32>
    %94 = arith.divf %92, %93 : vector<8x1xf32>
    %95 = vector.broadcast %87 : vector<8x1xf32> to vector<8x128xf32>
    %96 = arith.subf %81, %95 : vector<8x128xf32>
    %cst_33 = arith.constant 9.99999974E-6 : f32
    %97 = vector.broadcast %cst_33 : f32 to vector<8x1xf32>
    %98 = arith.addf %94, %97 : vector<8x1xf32>
    %99 = math.rsqrt %98 : vector<8x1xf32>
    %100 = vector.broadcast %99 : vector<8x1xf32> to vector<8x128xf32>
    %101 = arith.mulf %96, %100 : vector<8x128xf32>
    %102 = vector.broadcast %82 : vector<1x128xf32> to vector<8x128xf32>
    %103 = arith.mulf %101, %102 : vector<8x128xf32>
    %104 = vector.broadcast %83 : vector<1x128xf32> to vector<8x128xf32>
    %105 = arith.addf %103, %104 : vector<8x128xf32>
    %106 = arith.truncf %105 : vector<8x128xf32> to vector<8x128xbf16>
    %c0_34 = arith.constant 0 : index
    %c0_35 = arith.constant 0 : index
    %107 = vector.load %arg9[%c0_34, %c0_35] : memref<128x512xbf16, #tpu.memory_space<vmem>>, vector<128x512xbf16>
    %cst_36 = arith.constant dense<0.000000e+00> : vector<8x512xf32>
    %108 = tpu.matmul %106, %107, %cst_36 {dimension_numbers = #tpu.dot_dimension_numbers<[1], [0], [0], [1], [0, 0, 1, 1], [], []>} : vector<8x128xbf16>, vector<128x512xbf16>, vector<8x512xf32> -> vector<8x512xf32>
    %c0_37 = arith.constant 0 : index
    %c0_38 = arith.constant 0 : index
    %109 = vector.load %arg10[%c0_37, %c0_38] : memref<1x512xf32, #tpu.memory_space<vmem>>, vector<1x512xf32>
    %110 = vector.broadcast %109 : vector<1x512xf32> to vector<8x512xf32>
    %111 = arith.addf %108, %110 : vector<8x512xf32>
    %cst_39 = arith.constant 0.000000e+00 : f32
    %112 = vector.broadcast %cst_39 : f32 to vector<8x512xf32>
    %113 = arith.maximumf %111, %112 : vector<8x512xf32>
    %114 = arith.truncf %113 : vector<8x512xf32> to vector<8x512xbf16>
    %c0_40 = arith.constant 0 : index
    %c0_41 = arith.constant 0 : index
    %115 = vector.load %arg11[%c0_40, %c0_41] : memref<512x128xbf16, #tpu.memory_space<vmem>>, vector<512x128xbf16>
    %cst_42 = arith.constant dense<0.000000e+00> : vector<8x128xf32>
    %116 = tpu.matmul %114, %115, %cst_42 {dimension_numbers = #tpu.dot_dimension_numbers<[1], [0], [0], [1], [0, 0, 1, 1], [], []>} : vector<8x512xbf16>, vector<512x128xbf16>, vector<8x128xf32> -> vector<8x128xf32>
    %c0_43 = arith.constant 0 : index
    %c0_44 = arith.constant 0 : index
    %117 = vector.load %arg12[%c0_43, %c0_44] : memref<1x128xf32, #tpu.memory_space<vmem>>, vector<1x128xf32>
    %118 = vector.broadcast %117 : vector<1x128xf32> to vector<8x128xf32>
    %119 = arith.addf %116, %118 : vector<8x128xf32>
    %120 = arith.addf %81, %119 : vector<8x128xf32>
    %121 = vector.shape_cast %120 : vector<8x128xf32> to vector<1x8x128xf32>
    %c0_45 = arith.constant 0 : index
    %c0_46 = arith.constant 0 : index
    %c0_47 = arith.constant 0 : index
    %122 = vector.load %arg13[%c0_45, %c0_46, %c0_47] : memref<1x8x128xf32, #tpu.memory_space<vmem>>, vector<1x8x128xf32>
    tpu.vector_store %arg13[%c0_45, %c0_46, %c0_47], %121 {strides = array<i32>} : memref<1x8x128xf32, #tpu.memory_space<vmem>>, vector<1x8x128xf32>,
    return
  }
  func.func @transform_0(%arg0: i32) -> (i32, i32, i32) {
    %c0_i32 = arith.constant 0 : i32
    %c0_i32_0 = arith.constant 0 : i32
    %c0_i32_1 = arith.constant 0 : i32
    return %arg0, %c0_i32, %c0_i32_0 : i32, i32, i32
  }
  func.func @transform_1(%arg0: i32) -> (i32, i32) {
    %c0_i32 = arith.constant 0 : i32
    %c0_i32_0 = arith.constant 0 : i32
    %c0_i32_1 = arith.constant 0 : i32
    return %c0_i32, %c0_i32_0 : i32, i32
  }
  func.func @transform_2(%arg0: i32) -> (i32, i32) {
    %c0_i32 = arith.constant 0 : i32
    %c0_i32_0 = arith.constant 0 : i32
    %c0_i32_1 = arith.constant 0 : i32
    return %c0_i32, %c0_i32_0 : i32, i32
  }
  func.func @transform_3(%arg0: i32) -> (i32, i32) {
    %c0_i32 = arith.constant 0 : i32
    %c0_i32_0 = arith.constant 0 : i32
    %c0_i32_1 = arith.constant 0 : i32
    return %c0_i32, %c0_i32_0 : i32, i32
  }
  func.func @transform_4(%arg0: i32) -> (i32, i32) {
    %c0_i32 = arith.constant 0 : i32
    %c0_i32_0 = arith.constant 0 : i32
    %c0_i32_1 = arith.constant 0 : i32
    return %c0_i32, %c0_i32_0 : i32, i32
  }
  func.func @transform_5(%arg0: i32) -> (i32, i32) {
    %c0_i32 = arith.constant 0 : i32
    %c0_i32_0 = arith.constant 0 : i32
    %c0_i32_1 = arith.constant 0 : i32
    return %c0_i32, %c0_i32_0 : i32, i32
  }
  func.func @transform_6(%arg0: i32) -> (i32, i32) {
    %c0_i32 = arith.constant 0 : i32
    %c0_i32_0 = arith.constant 0 : i32
    %c0_i32_1 = arith.constant 0 : i32
    return %c0_i32, %c0_i32_0 : i32, i32
  }
  func.func @transform_7(%arg0: i32) -> (i32, i32) {
    %c0_i32 = arith.constant 0 : i32
    %c0_i32_0 = arith.constant 0 : i32
    %c0_i32_1 = arith.constant 0 : i32
    return %c0_i32, %c0_i32_0 : i32, i32
  }
  func.func @transform_8(%arg0: i32) -> (i32, i32) {
    %c0_i32 = arith.constant 0 : i32
    %c0_i32_0 = arith.constant 0 : i32
    %c0_i32_1 = arith.constant 0 : i32
    return %c0_i32, %c0_i32_0 : i32, i32
  }
  func.func @transform_9(%arg0: i32) -> (i32, i32) {
    %c0_i32 = arith.constant 0 : i32
    %c0_i32_0 = arith.constant 0 : i32
    %c0_i32_1 = arith.constant 0 : i32
    return %c0_i32, %c0_i32_0 : i32, i32
  }
  func.func @transform_10(%arg0: i32) -> (i32, i32) {
    %c0_i32 = arith.constant 0 : i32
    %c0_i32_0 = arith.constant 0 : i32
    %c0_i32_1 = arith.constant 0 : i32
    return %c0_i32, %c0_i32_0 : i32, i32
  }
  func.func @transform_11(%arg0: i32) -> (i32, i32) {
    %c0_i32 = arith.constant 0 : i32
    %c0_i32_0 = arith.constant 0 : i32
    %c0_i32_1 = arith.constant 0 : i32
    return %c0_i32, %c0_i32_0 : i32, i32
  }
  func.func @transform_12(%arg0: i32) -> (i32, i32, i32) {
    %c0_i32 = arith.constant 0 : i32
    %c0_i32_0 = arith.constant 0 : i32
    %c0_i32_1 = arith.constant 0 : i32
    return %arg0, %c0_i32, %c0_i32_0 : i32, i32, i32
  }
}

</mosaic_0001>

<bundles_post_ra>
// kernel: tpu_custom_call.1
= control target key start
LH: loop header
LB: loop body
LE: loop exit
PB: predicated region body
PF: predicated region fallthrough
CT: control target
= control target key end

     0   :  { %s5295_s0 = inlined_call_operand.hbm [shape: f32[2,8,128], index: 0, kind: input, shape index: {}]   ;;  %s5296_s1 = inlined_call_operand.vmem [shape: f32[1,128], index: 1, kind: input, shape index: {}]   ;;  %s5297_s2 = inlined_call_operand.vmem [shape: f32[1,128], index: 2, kind: input, shape index: {}]   ;;  %s5298_s3 = inlined_call_operand.hbm [shape: bf16[128,384], index: 3, kind: input, shape index: {}]   ;;  %s5299_s4 = inlined_call_operand.hbm [shape: bf16[128,128], index: 4, kind: input, shape index: {}]   ;;  %s5300_s5 = inlined_call_operand.vmem [shape: f32[1,128], index: 5, kind: input, shape index: {}]   ;;  %s5301_s6 = inlined_call_operand.vmem [shape: f32[1,128], index: 6, kind: input, shape index: {}]   ;;  %s5302_s7 = inlined_call_operand.vmem [shape: f32[1,128], index: 7, kind: input, shape index: {}]   ;;  %s5303_s8 = inlined_call_operand.hbm [shape: bf16[128,512], index: 8, kind: input, shape index: {}]   ;;  %s5304_s9 = inlined_call_operand.vmem [shape: f32[1,512], index: 9, kind: input, shape index: {}]   ;;  %s5305_s10 = inlined_call_operand.hbm [shape: bf16[512,128], index: 10, kind: input, shape index: {}]   ;;  %s5306_s11 = inlined_call_operand.vmem [shape: f32[1,128], index: 11, kind: input, shape index: {}]   ;;  %s5307_s12 = inlined_call_operand.hbm [shape: f32[2,8,128], index: 12, kind: output, shape index: {}]  }
   0x1   :  { %5312 = sst [smem:[#allocation16_spill]] %s5298_s3 }
   0x2   :  { %5313 = sst [smem:[#allocation17_spill]] %s5302_s7 }
   0x3   :  { %5314 = sst [smem:[#allocation18_spill]] %s5304_s9 }
   0x4   :  { %5315 = sst [smem:[#allocation19_spill]] %s5306_s11 }
   0x5   :  { %5316 = sst [smem:[#allocation20_spill]] %s5307_s12 }
   0x6   :  { %17 = vsyncpa [#allocation3], 0 }
   0x7   :  { %19 = vsyncpa [#allocation3 + $0x1], 0 }
   0x8   :  { %20 = vsyncpa [#allocation6], 0 }
   0x9   :  { %21 = vsyncpa [#allocation9], 0 }
   0xa   :  { %22 = vsyncpa [#allocation4], 0 }
   0xb   :  { %24 = vsyncpa [#allocation4 + $0x1], 0  ;;  %s4770_s21 = smov 0   ;;  %s4772_s22 = smov 0  }
   0xc   :  { %s4774_s23 = smov 0   ;;  %s4776_s24 = smov 0  }
   0xd LB: > { %s4690_s25 = smov [#allocation5]   ;;  %s4791_s27 = sadd.s32 4294967295, %s4688_s24   ;;  %s4688_s24 = sphi %s4776_s24, %s5344_s24   ;;  %s4684_s23 = sphi %s4774_s23, %s5343_s23   ;;  %s4680_s22 = sphi %s4772_s22, %s5342_s22   ;;  %s4676_s21 = sphi %s4770_s21, %s5341_s21  }
   0xe   : > { %s336_s26 = sshll.u32 %s4690_s25, 4  ;;  %p3707_p0 = scmp.ge.s32.totalorder %s4688_s24, 1  ;;  %s4796_s26 = int_to_ptr.vmem [resolvable:$true] %s336_s26 }
   0xf   : > { %p5309_p1 = scmp.eq.s32.totalorder %s4791_s27, 0  ;;  %p318_p2 = scmp.lt.s32.totalorder %s4688_s24, 3 }
  0x10   : > { %s4691_s29 = smov [#allocation8]   ;;  %s4692_s14 = smov [#allocation7]  }
  0x11   : > { %p4798_p3 = pnand %p3707_p0, %p318_p2  ;;  %s371_s30 = sshll.u32 %s4691_s29, 4  ;;  %s4811_s30 = int_to_ptr.vmem [resolvable:$true] %s371_s30 }
  0x12   : > { %s4813_s15 = sshll.u32 %s4692_s14, 4  ;;  %s5319_s3 = sld [smem:[#allocation16_spill]]  ;;  %s350_s15 = int_to_ptr.vmem [resolvable:$true] %s4813_s15 }
  0x13   : > { %s5317_s28 = scalar_select %p4798_p3, 1, 0 }
  0x14   : > { %p4094_p5 = pneg %p4798_p3 }
  0x16   : > { %p4807_p6 = pnand %p4094_p5, %p5309_p1 }
  0x18   : > { %s4472_s18 = scalar_lea.hbm %s5319_s3, 3072  ;;  %p4823_p8 = pneg %p4807_p6 }
  0x19   : > { %p4473_p7 = scmp.ne.s32.totalorder %s5319_s3, %s4472_s18  ;;  %p4479_p11 = scmp.lt.u32.totalorder %s4472_s18, %s5319_s3 }
  0x1b   : > { %p4475_p9 = pnand %p4823_p8, %p4473_p7 }
  0x1d   : > { %p4476_p10 = pneg %p4475_p9 }
  0x1f   : > { %p4481_p12 = pnand %p4479_p11, %p4476_p10 }
  0x21   : > { %4484 = shalt.err (!%p4481_p12)
}
  0x22   : > { %s4485_s16 = scalar_lea.vmem %s4796_s26, 3072  ;;  %p4493_p5 = scmp.lt.s32.totalorder %s4796_s26, %s4796_s26 }
  0x23   : > { %p4486_p13 = scmp.ne.s32.totalorder %s4796_s26, %s4485_s16  ;;  %p4494_p4 = scmp.lt.s32.totalorder %s4485_s16, %s4485_s16 }
  0x25   : > { %p4488_p0 = pnand %p4486_p13, %p4823_p8  ;;  %p4495_p7 = por %p4494_p4, %p4493_p5 }
  0x27   : > { %p4489_p2 = pneg %p4488_p0 }
  0x29   : > { %p4496_p9 = pnand %p4495_p7, %p4489_p2 }
  0x2b   : > { %4499 = shalt.err (!%p4496_p9)
}
  0x2c   : > { %s4693_s17 = smov 192   ;;  %s4694_s18 = smov 12  }
  0x2d   : > { %4097 = dma.hbm_to_vmem [thread:$0]  (!%p4807_p6), %s5319_s3, 3072, %s4796_s26, [#allocation6], %s4693_s17, %s4693_s17, %s4694_s18  }
  0x2e   : > { %s4500_s12 = scalar_lea.hbm %s5303_s8, 4096 }
  0x2f   : > { %p4501_p4 = scmp.ne.s32.totalorder %s5303_s8, %s4500_s12  ;;  %p4507_p12 = scmp.lt.u32.totalorder %s4500_s12, %s5303_s8 }
  0x31   : > { %p4503_p10 = pnand %p4501_p4, %p4823_p8 }
  0x33   : > { %p4504_p11 = pneg %p4503_p10 }
  0x35   : > { %p4509_p13 = pnand %p4507_p12, %p4504_p11 }
  0x37   : > { %4512 = shalt.err (!%p4509_p13)
}
  0x38   : > { %s4513_s26 = scalar_lea.vmem %s4811_s30, 4096  ;;  %p4521_p7 = scmp.lt.s32.totalorder %s4811_s30, %s4811_s30 }
  0x39   : > { %p4514_p0 = scmp.ne.s32.totalorder %s4811_s30, %s4513_s26  ;;  %p4522_p9 = scmp.lt.s32.totalorder %s4513_s26, %s4513_s26 }
  0x3b   : > { %p4516_p2 = pnand %p4514_p0, %p4823_p8  ;;  %p4523_p4 = por %p4522_p9, %p4521_p7 }
  0x3d   : > { %p4517_p5 = pneg %p4516_p2 }
  0x3f   : > { %p4524_p10 = pnand %p4523_p4, %p4517_p5 }
  0x41   : > { %4527 = shalt.err (!%p4524_p10)
}
  0x42   : > { %s4695_s9 = smov 256   ;;  %s4696_s7 = smov 16  }
  0x43   : > { %4103 = dma.hbm_to_vmem [thread:$0]  (!%p4807_p6), %s5303_s8, 4096, %s4811_s30, [#allocation9], %s4695_s9, %s4695_s9, %s4696_s7  }
  0x44   : > { %s4528_s19 = scalar_lea.hbm %s5299_s4, 1024 }
  0x45   : > { %p4529_p11 = scmp.ne.s32.totalorder %s5299_s4, %s4528_s19  ;;  %p4535_p0 = scmp.lt.u32.totalorder %s4528_s19, %s5299_s4 }
  0x47   : > { %p4531_p12 = pnand %p4529_p11, %p4823_p8 }
  0x49   : > { %p4532_p13 = pneg %p4531_p12 }
  0x4b   : > { %p4537_p2 = pnand %p4535_p0, %p4532_p13 }
  0x4d   : > { %4540 = shalt.err (!%p4537_p2)
}
  0x4e   : > { %s4541_s26 = scalar_lea.vmem %s350_s15, 1024  ;;  %p4549_p4 = scmp.lt.s32.totalorder %s350_s15, %s350_s15 }
  0x4f   : > { %p4542_p5 = scmp.ne.s32.totalorder %s350_s15, %s4541_s26  ;;  %p4550_p10 = scmp.lt.s32.totalorder %s4541_s26, %s4541_s26 }
  0x51   : > { %p4544_p7 = pnand %p4542_p5, %p4823_p8  ;;  %p4551_p1 = por %p4550_p10, %p4549_p4 }
  0x53   : > { %p4545_p9 = pneg %p4544_p7 }
  0x55   : > { %p4552_p3 = pnand %p4551_p1, %p4545_p9 }
  0x57   : > { %4555 = shalt.err (!%p4552_p3)
}
  0x58   : > { %s4697_s30 = smov 64   ;;  %s4698_s9 = smov 4  }
  0x59   : > { %4100 = dma.hbm_to_vmem [thread:$0]  (!%p4807_p6), %s5299_s4, 1024, %s350_s15, [#allocation6], %s4697_s30, %s4697_s30, %s4698_s9  }
  0x5a   : > { %s4699_s12 = smov [#allocation10]   ;;  %s4556_s20 = scalar_lea.hbm %s5305_s10, 4096 }
  0x5b   : > { %s387_s17 = sshll.u32 %s4699_s12, 4  ;;  %p4557_p1 = scmp.ne.s32.totalorder %s5305_s10, %s4556_s20  ;;  %s388_s17 = int_to_ptr.vmem [resolvable:$true] %s387_s17 }
  0x5c   : > { %p4563_p12 = scmp.lt.u32.totalorder %s4556_s20, %s5305_s10 }
  0x5d   : > { %p4559_p3 = pnand %p4557_p1, %p4823_p8 }
  0x5f   : > { %p4560_p11 = pneg %p4559_p3 }
  0x61   : > { %p4565_p13 = pnand %p4563_p12, %p4560_p11 }
  0x63   : > { %4568 = shalt.err (!%p4565_p13)
}
  0x64   : > { %s4569_s15 = scalar_lea.vmem %s388_s17, 4096  ;;  %p4577_p7 = scmp.lt.s32.totalorder %s388_s17, %s388_s17 }
  0x65   : > { %p4570_p0 = scmp.ne.s32.totalorder %s388_s17, %s4569_s15  ;;  %p4578_p9 = scmp.lt.s32.totalorder %s4569_s15, %s4569_s15 }
  0x67   : > { %p4572_p2 = pnand %p4570_p0, %p4823_p8  ;;  %p4579_p4 = por %p4578_p9, %p4577_p7 }
  0x69   : > { %p4573_p5 = pneg %p4572_p2 }
  0x6b   : > { %p4580_p10 = pnand %p4579_p4, %p4573_p5 }
  0x6d   : > { %4583 = shalt.err (!%p4580_p10)
}
  0x6e   : > { %4106 = dma.hbm_to_vmem [thread:$0]  (!%p4807_p6), %s5305_s10, 4096, %s388_s17, [#allocation9], %s4697_s30, %s4697_s30, %s4698_s9  }
  0x6f   : > { %s3706_s25 = sadd.s32 4294967294, %s4688_s24   ;;  %s4906_s13 = sadd.s32 1, %s4688_s24  }
  0x70   : > { %s34_s12 = ssub.s32 %s4688_s24, %s4906_s13  ;;  %s37_s18 = sadd.s32 1, %s4684_s23 }
  0x71   : > { %p35_p8 = scmp.eq.s32.totalorder %s34_s12, 0  ;;  %p44_p1 = scmp.ne.s32.totalorder %s4684_s23, %s4680_s22 }
  0x72   : > { %p45_p3 = scmp.eq.s32.totalorder %s4688_s24, 0  ;;  %p50_p11 = scmp.ne.s32.totalorder %s4680_s22, %s4676_s21 }
  0x73   : > { %s4917_s19 = scalar_select %p35_p8, %s4684_s23, %s37_s18  }
  0x74   : > { %p4919_p12 = por %p45_p3, %p44_p1  ;;  %p5322_p13 = scmp.eq.s32.totalorder %s4791_s27, 0 }
  0x75   : > { %p305_p0 = scmp.eq.s32.totalorder %s4791_s27, 1  ;;  %p311_p2 = scmp.eq.s32.totalorder %s3706_s25, 1 }
  0x76   : > { %p4925_p6 = por %p5322_p13, %p50_p11  ;;  %p4119_p5 = scmp.lt.s32.totalorder %s4688_s24, 2 }
  0x77   : > { %s404_s9 = sand.u32 1, %s4684_s23   ;;  %p4932_p7 = por %p305_p0, %p44_p1 }
  0x78   : > { %p4936_p9 = por %p311_p2, %p50_p11  ;;  %s3713_s14 = sshll.u32 %s404_s9, 3 }
  0x79   : > { %s5324_s17 = scalar_select %p4932_p7, 1, 0 }
  0x7a   : > { %s5325_s29 = scalar_select %p4936_p9, 1, 0 }
  0x7b   : > { %s3714_s16 = sshll.u32 %s4688_s24, 7  ;;  %s408_s11 = scalar_lea.vmem [#allocation2], %s3713_s14 }
  0x7c   : > { %s4944_s7 = scalar_lea.hbm %s5295_s0, %s3714_s16  ;;  %s415_s25 = sshll.u32 %s408_s11, 4  ;;  %s4946_s25 = int_to_ptr.vmem [resolvable:$true] %s415_s25 }
  0x7d   : > { %p4950_p4 = pnand %p4119_p5, %p4919_p12  ;;  %s405_s18 = scalar_lea.sflag [#allocation3], %s404_s9 }
  0x7e   : > { %s4584_s3 = scalar_lea.hbm %s4944_s7, 128  ;;  %s4589_s26 = scalar_lea.hbm %s5295_s0, 256 }
  0x7f   : > { %p4585_p10 = scmp.ne.s32.totalorder %s4944_s7, %s4584_s3  ;;  %p4586_p8 = pneg %p4950_p4 }
  0x80   : > { %p4590_p11 = scmp.lt.u32.totalorder %s4944_s7, %s5295_s0  ;;  %p4591_p12 = scmp.lt.u32.totalorder %s4589_s26, %s4584_s3 }
  0x81   : > { %p4587_p1 = pnand %p4586_p8, %p4585_p10  ;;  %p4593_p0 = scmp.lt.u32.totalorder %s4584_s3, %s4944_s7 }
  0x82   : > { %p4592_p13 = por %p4591_p12, %p4590_p11 }
  0x83   : > { %p4588_p3 = pneg %p4587_p1 }
  0x84   : > { %p4594_p2 = por %p4593_p0, %p4592_p13 }
  0x86   : > { %p4595_p5 = pnand %p4594_p2, %p4588_p3 }
  0x88   : > { %4598 = shalt.err (!%p4595_p5)
}
  0x89   : > { %s4599_s9 = scalar_lea.vmem %s4946_s25, 128  ;;  %s4700_s11 = smov [#allocation2]  }
  0x8a   : > { %p4600_p10 = scmp.ne.s32.totalorder %s4946_s25, %s4599_s9  ;;  %s4604_s14 = sshll.u32 %s4700_s11, 4  ;;  %s4605_s14 = int_to_ptr.vmem [resolvable:$false] %s4604_s14 }
  0x8b   : > { %s4606_s16 = scalar_lea.vmem %s4605_s14, 256  ;;  %p4607_p7 = scmp.lt.s32.totalorder %s4946_s25, %s4605_s14 }
  0x8c   : > { %p4602_p1 = pnand %p4600_p10, %p4586_p8  ;;  %p4608_p11 = scmp.lt.s32.totalorder %s4606_s16, %s4599_s9 }
  0x8e   : > { %p4603_p9 = pneg %p4602_p1  ;;  %p4609_p12 = por %p4608_p11, %p4607_p7 }
  0x90   : > { %p4610_p13 = pnand %p4609_p12, %p4603_p9 }
  0x92   : > { %4613 = shalt.err (!%p4610_p13)
}
  0x93   : > { %4110 = dma.hbm_to_vmem [thread:$0]  (!%p4950_p4), %s4944_s7, 128, %s4946_s25, %s405_s18  }
  0x94   : > { %p5327_p3 = scmp.ne.s32.totalorder %s5317_s28, 0 }
  0x95   : > { %s4982_s3 = sand.u32 (!%p5327_p3), 1, %s4680_s22  }
  0x96   : > { %424 = sbr.rel (%p5327_p3) target bundleno = 3114 (0xc2a), region = 68  ;;  %s3716_s26 = sshll.u32 (!%p5327_p3), %s4982_s3, 3 }
  0x97   : > { %s427_s20 = scalar_lea.sflag (!%p5327_p3), [#allocation3], %s4982_s3  ;;  %s4988_s15 = scalar_lea.vmem (!%p5327_p3), [#allocation2], %s3716_s26 }
  0x9d   : > { %4659 = dma.done.wait (%p4925_p6), %s427_s20, 128  }
  0x9e   : > { %4661 = vsyncadd (%p4925_p6), %s427_s20, 4294967168  ;;  %p5328_p7 = scmp.eq.s32.totalorder %s4791_s27, 0 }
  0xa0   : > { %4663 = dma.done.wait (%p5328_p7), [#allocation6], 4096   ;;  %p5329_p9 = pmov %p5328_p7 }
  0xa1   : > { %p5330_p4 = pmov %p5328_p7 }
  0xa2   : > { %4665 = vsyncadd (%p5329_p9), [#allocation6], 4294963200 }
  0xa3   : > { %4667 = dma.done.wait (%p5330_p4), [#allocation9], 8192   ;;  %p5331_p8 = pmov %p5330_p4 }
  0xa4   : > { %v488_v0 = vld [vmem:[%s4988_s15] sm:$0xff]  ;;  %v4317_v2 = vld [vmem:[#allocation5] ss:$12 sps:$4 sm:$0xff]   ;;  %v4701_v3 = vmov 0.0   ;;  %v4702_v25 = vmov 0   ;;  %vm4703_vm0 = vmmov 0  }
  0xa5   : > { %4669 = vsyncadd (%p5331_p8), [#allocation9], 4294959104  ;;  %491 = vadd.xlane.f32.xlu0 %v488_v0  ;;  %v4315_v1 = vld [vmem:[#allocation5 + $0x4] ss:$12 sps:$4 sm:$0xff]   ;;  %3938 = vmatprep.subr.bf16.mxu1 %v4701_v3  ;;  %v4318_v4 = vld [vmem:[#allocation5 + $0x8] ss:$12 sps:$4 sm:$0xff]  }
  0xa6   : > { %v4319_v5 = vld [vmem:[#allocation5 + $0x1c] ss:$12 sps:$4 sm:$0xff]   ;;  %v4321_v6 = vld [vmem:[#allocation5 + $0x18] ss:$12 sps:$4 sm:$0xff]   ;;  %678 = vmatprep.subr.bf16.mxu0 %v4315_v1  ;;  %v4322_v7 = vld [vmem:[#allocation5 + $0x20] ss:$12 sps:$4 sm:$0xff]   ;;  %3939 = vmatpush3.bf16.msra.mxu1 %v4318_v4 }
  0xa7   : > { %v4323_v8 = vld [vmem:[#allocation5 + $0x34] ss:$12 sps:$4 sm:$0xff]   ;;  %679 = vmatpush1.bf16.msra.mxu0 %v4317_v2  ;;  %3940 = vmatprep.subr.bf16.mxu1 %v4701_v3  ;;  %v4325_v13 = vld [vmem:[#allocation5 + $0x30] ss:$12 sps:$4 sm:$0xff]   ;;  %v4326_v14 = vld [vmem:[#allocation5 + $0x38] ss:$12 sps:$4 sm:$0xff]  }
  0xa8   : > { %680 = vmatprep.subr.bf16.mxu0 %v4319_v5  ;;  %v4327_v15 = vld [vmem:[#allocation5 + $0x4c] ss:$12 sps:$4 sm:$0xff]   ;;  %v4329_v16 = vld [vmem:[#allocation5 + $0x48] ss:$12 sps:$4 sm:$0xff]   ;;  %v4330_v17 = vld [vmem:[#allocation5 + $0x50] ss:$12 sps:$4 sm:$0xff]   ;;  %710 = vmatprep.mubr.bf16.mxu0 %v4702_v25 }
  0xa9   : > { %v4331_v18 = vld [vmem:[#allocation5 + $0x64] ss:$12 sps:$4 sm:$0xff]   ;;  %v4333_v19 = vld [vmem:[#allocation5 + $0x60] ss:$12 sps:$4 sm:$0xff]   ;;  %v4334_v20 = vld [vmem:[#allocation5 + $0x68] ss:$12 sps:$4 sm:$0xff]   ;;  %3954 = vmatprep.mubr.msk.bf16.mxu1 %vm4703_vm0, %v4701_v3 }
  0xaa   : > { %3941 = vmatpush3.bf16.msra.mxu1 %v4322_v7  ;;  %v4335_v21 = vld [vmem:[#allocation5 + $0x7c] ss:$12 sps:$4 sm:$0xff]   ;;  %v4337_v22 = vld [vmem:[#allocation5 + $0x78] ss:$12 sps:$4 sm:$0xff]   ;;  %v4338_v23 = vld [vmem:[#allocation5 + $0x80] ss:$12 sps:$4 sm:$0xff]  }
  0xab   : > { %681 = vmatpush1.bf16.msra.mxu0 %v4321_v6  ;;  %3942 = vmatprep.subr.bf16.mxu1 %v4701_v3  ;;  %v4339_v24 = vld [vmem:[#allocation5 + $0x94] ss:$12 sps:$4 sm:$0xff]   ;;  %v4341_v26 = vld [vmem:[#allocation5 + $0x90] ss:$12 sps:$4 sm:$0xff]   ;;  %v4342_v27 = vld [vmem:[#allocation5 + $0x98] ss:$12 sps:$4 sm:$0xff]  }
  0xac   : > { %682 = vmatprep.subr.bf16.mxu0 %v4323_v8  ;;  %v4343_v28 = vld [vmem:[#allocation5 + $0xac] ss:$12 sps:$4 sm:$0xff]   ;;  %v4345_v29 = vld [vmem:[#allocation5 + $0xa8] ss:$12 sps:$4 sm:$0xff]   ;;  %v4346_v30 = vld [vmem:[#allocation5 + $0xb0] ss:$12 sps:$4 sm:$0xff]  }
  0xad   : > { %v3722_v35 = vld [vmem:[%s5296_s1] ss:$0 sm:$0xff]  ;;  %vm1652_vm1 = vcmask 130048   ;;  %vm2039_vm3 = vcmask 64512   ;;  %vm2139_vm4 = vcmask 1043456   ;;  %s5334_s20 = sld [smem:[#allocation17_spill]] }
  0xae   : > { %3943 = vmatpush3.bf16.msra.mxu1 %v4326_v14  ;;  %v3723_v37 = vld [vmem:[%s5297_s2] ss:$0 sm:$0xff]  ;;  %s5335_s30 = sld [smem:[#allocation18_spill]]  ;;  %s5336_s12 = sld [smem:[#allocation19_spill]] }
  0xaf   : > { %683 = vmatpush1.bf16.msra.mxu0 %v4325_v13  ;;  %3944 = vmatprep.subr.bf16.mxu1 %v4701_v3  ;;  %s3841_s18 = sshll.u32 %s4791_s27, 7  ;;  %s486_s9 = scalar_lea.vmem [#allocation11], %s3716_s26 }
  0xb0   : > { %684 = vmatprep.subr.bf16.mxu0 %v4327_v15  ;;  %s3598_s11 = sshll.u32 %s486_s9, 4  ;;  %s3585_s28 = scalar_lea.sflag [#allocation4], %s4982_s3  ;;  %s5253_s11 = int_to_ptr.vmem [resolvable:$true] %s3598_s11 }
  0xb1   : > { %p5338_p0 = scmp.ne.s32.totalorder %s5324_s17, 0  ;;  %s4704_s27 = smov [#allocation11]  }
  0xb2   : > { %3945 = vmatpush3.bf16.msra.mxu1 %v4330_v17  ;;  %s4618_s26 = sshll.u32 %s4704_s27, 4  ;;  %s4619_s26 = int_to_ptr.vmem [resolvable:$false] %s4618_s26 }
  0xb3   : > { %685 = vmatpush1.bf16.msra.mxu0 %v4329_v16  ;;  %3946 = vmatprep.subr.bf16.mxu1 %v4701_v3  ;;  %s4620_s7 = scalar_lea.vmem %s4619_s26, 256  ;;  %p4621_p10 = scmp.lt.s32.totalorder %s5253_s11, %s4619_s26 }
  0xb4   : > { %686 = vmatprep.subr.bf16.mxu0 %v4331_v18 }
  0xb6   : > { %3947 = vmatpush3.bf16.msra.mxu1 %v4334_v20 }
  0xb7   : > { %687 = vmatpush1.bf16.msra.mxu0 %v4333_v19  ;;  %3948 = vmatprep.subr.bf16.mxu1 %v4701_v3 }
  0xb8   : > { %688 = vmatprep.subr.bf16.mxu0 %v4335_v21 }
  0xba   : > { %3949 = vmatpush3.bf16.msra.mxu1 %v4338_v23 }
  0xbb   : > { %689 = vmatpush1.bf16.msra.mxu0 %v4337_v22  ;;  %3950 = vmatprep.subr.bf16.mxu1 %v4701_v3 }
  0xbc   : > { %690 = vmatprep.subr.bf16.mxu0 %v4339_v24 }
  0xbe   : > { %3951 = vmatpush3.bf16.msra.mxu1 %v4342_v27 }
  0xbf   : > { %691 = vmatpush1.bf16.msra.mxu0 %v4341_v26  ;;  %3952 = vmatprep.subr.bf16.mxu1 %v4701_v3 }
  0xc0   : > { %692 = vmatprep.subr.bf16.mxu0 %v4343_v28 }
  0xc2   : > { %3953 = vmatpush3.bf16.msra.mxu1 %v4346_v30 }
  0xc3   : > { %693 = vmatpush1.bf16.msra.mxu0 %v4345_v29  ;;  %3958 = vmatprep.subr.bf16.mxu1 %v4701_v3 }
  0xc4   : > { %3982 = vmatprep.subr.bf16.mxu0 %v4701_v3 }
 0x132   : > { %v492_v9 = vpop.xlane.xlu0 %491 }
 0x133   : > { %v494_v10 = vmul.f32 0.0078125, %v492_v9 }
 0x135   : > { %v495_v11 = vsub.f32 %v488_v0, %v494_v10 }
 0x137   : > { %v496_v12 = vmul.f32 %v495_v11, %v495_v11 }
 0x139   : > { %497 = vadd.xlane.f32.xlu0 %v496_v12 }
 0x1c6   : > { %v498_v31 = vpop.xlane.xlu0 %497 }
 0x1c7   : > { %v499_v32 = vmul.f32 0.0078125, %v498_v31 }
 0x1c9   : > { %v500_v33 = vadd.f32 1e-05, %v499_v32 }
 0x1cb   : > { %4435 = vrsqrt.f32 %v500_v33 }
 0x1d5   : > { %v4436_v34 = vpop.eup %4435 }
 0x1d6   : > { %v502_v36 = vmul.f32 %v4436_v34, %v495_v11 }
 0x1d8   : > { %v509_v38 = vmul.f32 %v3722_v35, %v502_v36 }
 0x1da   : > { %v516_v39 = vadd.f32 %v3723_v37, %v509_v38 }
 0x1dc   : > { %v517_v40 = vpack.c.bf16 %v516_v39, %v516_v39 }
 0x1de   : > { %711 = vmatmul.mubr.bf16.vlgmr.msra.gmra.mrb[0].mxu0 %v517_v40  ;;  %3955 = vmatmul.mubr.bf16.vlgmr.msra.gmra.mrb[0].mxu1 %v517_v40 }
 0x1df   : > { %3960 = vmatprep.mubr.msk.bf16.mxu1 %vm4703_vm0, %v4701_v3  ;;  %3984 = vmatprep.mubr.msk.bf16.mxu0 %vm4703_vm0, %v4701_v3 }
 0x2b1   : > { %v712_v41 = vpop.f32.mrb[0].mxu0  ;;  %v5026_v42 = vpop.f32.mrb[0].mxu1 }
 0x2b2   : > { %v714_v43 = vpop.f32.mrb[1].mxu0  ;;  %v3956_v44 = vpop.f32.mrb[1].mxu1 }
 0x2b3   : > { %v716_v45 = vpop.f32.mrb[2].mxu0  ;;  %v756_v46 = vpop.f32.mrb[2].mxu1  ;;  %v4170_v47 = vpack.i.bf16 %v712_v41, %v714_v43 }
 0x2b4   : > { %v717_v48 = vpop.f32.mrb[3].mxu0  ;;  %v3957_v49 = vpop.f32.mrb[3].mxu1 }
 0x2b5   : > { %4171 = vxpose.xlu1.b32.start.end [1/1] (short) %v4170_v47, 128 }
 0x335   : > { %v4172_v50 = vpop.trf.xlu1 }
 0x336   : > { %4253 = vxpose.xlu1.b32.start [1/2] (short) (narrow) %v4172_v50, 8 }
 0x339   : > { %v4177_v51 = vpop.trf.xlu1 }
 0x33a   : > { %4255 = vxpose.xlu1.b32.end [2/2] (short) (narrow) %v4177_v51, 8 }
 0x33d   : > { %v4182_v52 = vpop.trf.xlu1 }
 0x33e   : > { %4262 = vxpose.xlu0.b32.start [1/2] (short) (narrow) %v4182_v52, 8 }
 0x341   : > { %v4187_v53 = vpop.trf.xlu1 }
 0x342   : > { %4264 = vxpose.xlu0.b32.end [2/2] (short) (narrow) %v4187_v53, 8 }
 0x345   : > { %v4192_v54 = vpop.trf.xlu1 }
 0x346   : > { %4271 = vxpose.xlu0.b32.start [1/2] (short) (narrow) %v4192_v54, 8 }
 0x349   : > { %v4197_v55 = vpop.trf.xlu1 }
 0x34a   : > { %4273 = vxpose.xlu0.b32.end [2/2] (short) (narrow) %v4197_v55, 8 }
 0x34d   : > { %v4202_v56 = vpop.trf.xlu1 }
 0x34e   : > { %v4203_v60 = vunpack.i.l.bf16 %v4202_v56  ;;  %v4206_v5 = vunpack.i.h.bf16 %v4202_v56 }
 0x351   : > { %v4207_v57 = vpop.trf.xlu1 }
 0x352   : > { %v4208_v63 = vunpack.i.l.bf16 %v4207_v57  ;;  %v4211_v8 = vunpack.i.h.bf16 %v4207_v57 }
 0x355   : > { %v4212_v58 = vpop.trf.xlu1 }
 0x356   : > { %v4213_v59 = vunpack.i.l.bf16 %v4212_v58  ;;  %v4216_v13 = vunpack.i.h.bf16 %v4212_v58 }
 0x358   : > { %v4279_v61 = vpack.i.bf16 %v4213_v59, %v4203_v60 }
 0x359   : > { %v4217_v62 = vpop.trf.xlu1 }
 0x35a   : > { %v4218_v0 = vunpack.i.l.bf16 %v4217_v62  ;;  %4280 = vxpose.xlu0.b32.start [1/2] (short) (narrow) %v4279_v61, 8  ;;  %v4221_v16 = vunpack.i.h.bf16 %v4217_v62 }
 0x35c   : > { %v4281_v1 = vpack.i.bf16 %v4218_v0, %v4208_v63 }
 0x35d   : > { %v4222_v2 = vpop.trf.xlu1 }
 0x35e   : > { %4282 = vxpose.xlu0.b32.end [2/2] (short) (narrow) %v4281_v1, 8  ;;  %v4223_v4 = vunpack.i.l.bf16 %v4222_v2  ;;  %v4226_v21 = vunpack.i.h.bf16 %v4222_v2 }
 0x360   : > { %v4288_v6 = vpack.i.bf16 %v4223_v4, %v4206_v5 }
 0x361   : > { %v4227_v7 = vpop.trf.xlu1 }
 0x362   : > { %v4228_v9 = vunpack.i.l.bf16 %v4227_v7  ;;  %4289 = vxpose.xlu1.b32.start [1/2] (short) (narrow) %v4288_v6, 8  ;;  %v4231_v26 = vunpack.i.h.bf16 %v4227_v7 }
 0x364   : > { %v4290_v10 = vpack.i.bf16 %v4228_v9, %v4211_v8 }
 0x365   : > { %v4232_v11 = vpop.trf.xlu1 }
 0x366   : > { %4291 = vxpose.xlu1.b32.end [2/2] (short) (narrow) %v4290_v10, 8  ;;  %v4233_v12 = vunpack.i.l.bf16 %v4232_v11  ;;  %v4236_v22 = vunpack.i.h.bf16 %v4232_v11 }
 0x368   : > { %v4297_v14 = vpack.i.bf16 %v4233_v12, %v4216_v13 }
 0x369   : > { %v4237_v15 = vpop.trf.xlu1 }
 0x36a   : > { %v4238_v17 = vunpack.i.l.bf16 %v4237_v15  ;;  %4298 = vxpose.xlu0.b32.start [1/2] (short) (narrow) %v4297_v14, 8  ;;  %v4241_v28 = vunpack.i.h.bf16 %v4237_v15 }
 0x36c   : > { %v4299_v18 = vpack.i.bf16 %v4238_v17, %v4221_v16  ;;  %v1647_v17 = vlaneseq }
 0x36d   : > { %v4242_v19 = vpop.trf.xlu1 }
 0x36e   : > { %4300 = vxpose.xlu0.b32.end [2/2] (short) (narrow) %v4299_v18, 8  ;;  %v4243_v20 = vunpack.i.l.bf16 %v4242_v19  ;;  %v4246_v30 = vunpack.i.h.bf16 %v4242_v19  ;;  %v5068_v18 = vshrl.u32 %v1647_v17, 7  ;;  %v1650_v19 = vand.u32 127, %v1647_v17 }
 0x370   : > { %v4306_v23 = vpack.i.bf16 %v4243_v20, %v4226_v21  ;;  %vm5071_vm2 = vcmp.ge.s32.totalorder %v5068_v18, %v1650_v19 }
 0x371   : > { %v4247_v24 = vpop.trf.xlu1 }
 0x372   : > { %v4248_v27 = vunpack.i.l.bf16 %v4247_v24  ;;  %983 = vxpose.xlu0.b32.start [1/2] (short) (narrow) %v4236_v22, 8  ;;  %4307 = vxpose.xlu1.b32.start [1/2] (short) (narrow) %v4306_v23, 8  ;;  %v4251_v31 = vunpack.i.h.bf16 %v4247_v24 }
 0x374   : > { %v4308_v29 = vpack.i.bf16 %v4248_v27, %v4231_v26 }
 0x376   : > { %984 = vxpose.xlu0.b32.end [2/2] (short) (narrow) %v4241_v28, 8  ;;  %4309 = vxpose.xlu1.b32.end [2/2] (short) (narrow) %v4308_v29, 8 }
 0x37a   : > { %1015 = vxpose.xlu1.b32.start [1/2] (short) (narrow) %v4246_v30, 8 }
 0x37e   : > { %1016 = vxpose.xlu1.b32.end [2/2] (short) (narrow) %v4251_v31, 8 }
 0x3b6   : > { %v4256_v32 = vpop.trf.xlu1 }
 0x3b7   : > { %v4257_v33 = vunpack.i.l.bf16 %v4256_v32  ;;  %v4260_v35 = vunpack.i.h.bf16 %v4256_v32 }
 0x3b9   : > { %v1343_v34 = vpack.c.bf16 %v4257_v33, %v4257_v33  ;;  %v1047_v38 = vpack.c.bf16 %v4260_v35, %v4260_v35 }
 0x3bb   : > { %v1657_v36 = vsel %vm1652_vm1, %v1343_v34, 0 }
 0x3bc   : > { %3959 = vmatpush3.bf16.xpose.msra.mxu1 %v1657_v36 }
 0x3bd   : > { %3964 = vmatprep.subr.bf16.mxu1 %v4701_v3 }
 0x3be   : > { %v4265_v37 = vpop.trf.xlu0 }
 0x3bf   : > { %v4266_v39 = vunpack.i.l.bf16 %v4265_v37  ;;  %v4269_v41 = vunpack.i.h.bf16 %v4265_v37 }
 0x3c1   : > { %v1344_v40 = vpack.c.bf16 %v4266_v39, %v4266_v39  ;;  %v1048_v45 = vpack.c.bf16 %v4269_v41, %v4269_v41 }
 0x3c3   : > { %3961 = vmatmul.mubr.msk.bf16.vlgmr.msra.gmra.mrb[4].mxu1 %vm1652_vm1, %v1047_v38  ;;  %v1703_v43 = vsel %vm1652_vm1, %v1344_v40, 0 }
 0x3c4   : > { %3965 = vmatpush3.bf16.xpose.msra.mxu1 %v1703_v43  ;;  %3966 = vmatprep.mubr.msk.bf16.mxu1 %vm4703_vm0, %v4701_v3 }
 0x3c5   : > { %3970 = vmatprep.subr.bf16.mxu1 %v4701_v3 }
 0x3c6   : > { %v4274_v44 = vpop.trf.xlu0 }
 0x3c7   : > { %v4275_v46 = vunpack.i.l.bf16 %v4274_v44  ;;  %v4278_v48 = vunpack.i.h.bf16 %v4274_v44 }
 0x3c9   : > { %v1345_v47 = vpack.c.bf16 %v4275_v46, %v4275_v46  ;;  %v1049_v50 = vpack.c.bf16 %v4278_v48, %v4278_v48 }
 0x3cb   : > { %3967 = vmatmul.mubr.msk.bf16.vlgmr.msra.gmra.mrb[8].mxu1 %vm1652_vm1, %v1048_v45  ;;  %v1749_v49 = vsel %vm1652_vm1, %v1345_v47, 0 }
 0x3cc   : > { %3971 = vmatpush3.bf16.xpose.msra.mxu1 %v1749_v49  ;;  %3972 = vmatprep.mubr.msk.bf16.mxu1 %vm4703_vm0, %v4701_v3 }
 0x3cd   : > { %3976 = vmatprep.subr.bf16.mxu1 %v4701_v3 }
 0x3d3   : > { %3973 = vmatmul.mubr.msk.bf16.vlgmr.msra.gmra.mrb[12].mxu1 %vm1652_vm1, %v1049_v50 }
 0x3d4   : > { %3978 = vmatprep.mubr.msk.bf16.mxu1 %vm4703_vm0, %v4701_v3 }
 0x3da   : > { %v4283_v51 = vpop.trf.xlu0 }
 0x3db   : > { %v4287_v52 = vunpack.i.h.bf16 %v4283_v51  ;;  %v4284_v53 = vunpack.i.l.bf16 %v4283_v51 }
 0x3dd   : > { %v1346_v54 = vpack.c.bf16 %v4284_v53, %v4284_v53  ;;  %v1347_v55 = vpack.c.bf16 %v4287_v52, %v4287_v52 }
 0x3df   : > { %v1795_v56 = vsel %vm1652_vm1, %v1346_v54, 0  ;;  %v1841_v57 = vsel %vm1652_vm1, %v1347_v55, 0 }
 0x3e0   : > { %3977 = vmatpush3.bf16.xpose.msra.mxu1 %v1795_v56  ;;  %3983 = vmatpush3.bf16.xpose.msra.mxu0 %v1841_v57 }
 0x3e1   : > { %3988 = vmatprep.subr.bf16.mxu1 %v4701_v3  ;;  %3994 = vmatprep.subr.bf16.mxu0 %v4701_v3 }
 0x3e2   : > { %v4292_v58 = vpop.trf.xlu1 }
 0x3e3   : > { %v4296_v59 = vunpack.i.h.bf16 %v4292_v58  ;;  %v4293_v60 = vunpack.i.l.bf16 %v4292_v58 }
 0x3e5   : > { %v1050_v61 = vpack.c.bf16 %v4293_v60, %v4293_v60  ;;  %v1348_v62 = vpack.c.bf16 %v4296_v59, %v4296_v59 }
 0x3e7   : > { %3979 = vmatmul.mubr.msk.bf16.vlgmr.msra.gmra.mrb[16].mxu1 %vm1652_vm1, %v1050_v61  ;;  %v1887_v63 = vsel %vm1652_vm1, %v1348_v62, 0 }
 0x3e8   : > { %3989 = vmatpush3.bf16.xpose.msra.mxu1 %v1887_v63  ;;  %3990 = vmatprep.mubr.msk.bf16.mxu1 %vm4703_vm0, %v4701_v3 }
 0x3e9   : > { %4000 = vmatprep.subr.bf16.mxu1 %v4701_v3 }
 0x3ea   : > { %v4301_v0 = vpop.trf.xlu0 }
 0x3eb   : > { %v4305_v1 = vunpack.i.h.bf16 %v4301_v0  ;;  %v4302_v2 = vunpack.i.l.bf16 %v4301_v0 }
 0x3ed   : > { %v1051_v4 = vpack.c.bf16 %v4302_v2, %v4302_v2  ;;  %v1349_v5 = vpack.c.bf16 %v4305_v1, %v4305_v1 }
 0x3ef   : > { %3985 = vmatmul.mubr.msk.bf16.vlgmr.msra.gmra.mrb[4].mxu0 %vm1652_vm1, %v1051_v4  ;;  %v1933_v6 = vsel %vm1652_vm1, %v1349_v5, 0 }
 0x3f0   : > { %3995 = vmatpush3.bf16.xpose.msra.mxu0 %v1933_v6  ;;  %3996 = vmatprep.mubr.msk.bf16.mxu0 %vm4703_vm0, %v4701_v3 }
 0x3f1   : > { %4006 = vmatprep.subr.bf16.mxu0 %v4701_v3 }
 0x3f2   : > { %v4310_v7 = vpop.trf.xlu1  ;;  %v999_v8 = vpop.trf.xlu0 }
 0x3f3   : > { %v4314_v9 = vunpack.i.h.bf16 %v4310_v7  ;;  %v4311_v10 = vunpack.i.l.bf16 %v4310_v7  ;;  %v1053_v11 = vpack.c.bf16 %v999_v8, %v999_v8 }
 0x3f5   : > { %v1052_v12 = vpack.c.bf16 %v4311_v10, %v4311_v10  ;;  %v1350_v13 = vpack.c.bf16 %v4314_v9, %v4314_v9 }
 0x3f7   : > { %3991 = vmatmul.mubr.msk.bf16.vlgmr.msra.gmra.mrb[20].mxu1 %vm1652_vm1, %v1052_v12  ;;  %3997 = vmatmul.mubr.msk.bf16.vlgmr.msra.gmra.mrb[8].mxu0 %vm1652_vm1, %v1053_v11  ;;  %v1979_v14 = vsel %vm1652_vm1, %v1350_v13, 0 }
 0x3f8   : > { %4001 = vmatpush3.bf16.xpose.msra.mxu1 %v1979_v14  ;;  %4002 = vmatprep.mubr.msk.bf16.mxu1 %vm4703_vm0, %v4701_v3 }
 0x3f9   : > { %4012 = vmatprep.subr.bf16.mxu1 %v4701_v3  ;;  %4008 = vmatprep.mubr.msk.bf16.mxu0 %vm4703_vm0, %v4701_v3 }
 0x3fa   : > { %v1031_v15 = vpop.trf.xlu1 }
 0x3fb   : > { %v1054_v16 = vpack.c.bf16 %v1031_v15, %v1031_v15 }
 0x3ff   : > { %4003 = vmatmul.mubr.msk.bf16.vlgmr.msra.gmra.mrb[24].mxu1 %vm1652_vm1, %v1054_v16 }
 0x400   : > { %4014 = vmatprep.mubr.msk.bf16.mxu1 %vm4703_vm0, %v4701_v3 }
 0x496   : > { %v1693_v20 = vpop.f32.mrb[4].mxu1 }
 0x497   : > { %v2021_v22 = vmul.f32 0.088388346, %v1693_v20  ;;  %v3962_v23 = vpop.f32.mrb[5].mxu1 }
 0x498   : > { %v1696_v24 = vpop.f32.mrb[6].mxu1 }
 0x499   : > { %v5077_v26 = vsel %vm5071_vm2, %v2021_v22, -1e+30  ;;  %v3963_v27 = vpop.f32.mrb[7].mxu1 }
 0x49a   : > { %v2040_v28 = vsel %vm2039_vm3, %v5077_v26, -inf }
 0x49b   : > { %2041 = vmax.xlane.f32.xlu0 %v2040_v28 }
 0x49e   : > { %v1739_v29 = vpop.f32.mrb[8].mxu1 }
 0x49f   : > { %v2022_v30 = vmul.f32 0.088388346, %v1739_v29  ;;  %v3968_v31 = vpop.f32.mrb[9].mxu1 }
 0x4a0   : > { %v1742_v32 = vpop.f32.mrb[10].mxu1 }
 0x4a1   : > { %v2032_v33 = vsel %vm5071_vm2, %v2022_v30, -1e+30  ;;  %v3969_v34 = vpop.f32.mrb[11].mxu1 }
 0x4a2   : > { %v2043_v35 = vsel %vm2039_vm3, %v2032_v33, -inf }
 0x4a3   : > { %2044 = vmax.xlane.f32.xlu1 %v2043_v35 }
 0x4a6   : > { %v1785_v36 = vpop.f32.mrb[12].mxu1 }
 0x4a7   : > { %v2023_v37 = vmul.f32 0.088388346, %v1785_v36  ;;  %v3974_v38 = vpop.f32.mrb[13].mxu1 }
 0x4a8   : > { %v1788_v39 = vpop.f32.mrb[14].mxu1 }
 0x4a9   : > { %v5086_v40 = vsel %vm5071_vm2, %v2023_v37, -1e+30  ;;  %v3975_v41 = vpop.f32.mrb[15].mxu1 }
 0x4aa   : > { %v2046_v43 = vsel %vm2039_vm3, %v5086_v40, -inf }
 0x4ab   : > { %2047 = vmax.xlane.f32.xlu1 %v2046_v43 }
 0x4ba   : > { %v1831_v44 = vpop.f32.mrb[16].mxu1 }
 0x4bb   : > { %v2024_v45 = vmul.f32 0.088388346, %v1831_v44  ;;  %v3980_v46 = vpop.f32.mrb[17].mxu1 }
 0x4bc   : > { %v1834_v47 = vpop.f32.mrb[18].mxu1 }
 0x4bd   : > { %v5092_v48 = vsel %vm5071_vm2, %v2024_v45, -1e+30  ;;  %v3981_v49 = vpop.f32.mrb[19].mxu1 }
 0x4be   : > { %v2049_v50 = vsel %vm2039_vm3, %v5092_v48, -inf }
 0x4bf   : > { %2050 = vmax.xlane.f32.xlu0 %v2049_v50 }
 0x4c2   : > { %v1877_v51 = vpop.f32.mrb[4].mxu0 }
 0x4c3   : > { %v2025_v52 = vmul.f32 0.088388346, %v1877_v51  ;;  %v3986_v53 = vpop.f32.mrb[5].mxu0 }
 0x4c4   : > { %v1880_v54 = vpop.f32.mrb[6].mxu0 }
 0x4c5   : > { %v5098_v55 = vsel %vm5071_vm2, %v2025_v52, -1e+30  ;;  %v3987_v56 = vpop.f32.mrb[7].mxu0 }
 0x4c6   : > { %v2052_v57 = vsel %vm2039_vm3, %v5098_v55, -inf }
 0x4c7   : > { %2053 = vmax.xlane.f32.xlu1 %v2052_v57 }
 0x4ca   : > { %v1923_v58 = vpop.f32.mrb[20].mxu1  ;;  %v1969_v59 = vpop.f32.mrb[8].mxu0 }
 0x4cb   : > { %v2026_v60 = vmul.f32 0.088388346, %v1923_v58  ;;  %v2027_v61 = vmul.f32 0.088388346, %v1969_v59  ;;  %v3992_v62 = vpop.f32.mrb[21].mxu1  ;;  %v3998_v63 = vpop.f32.mrb[9].mxu0 }
 0x4cc   : > { %v1926_v0 = vpop.f32.mrb[22].mxu1  ;;  %v1972_v1 = vpop.f32.mrb[10].mxu0 }
 0x4cd   : > { %v3993_v2 = vpop.f32.mrb[23].mxu1  ;;  %v5104_v4 = vsel %vm5071_vm2, %v2026_v60, -1e+30  ;;  %v5108_v5 = vsel %vm5071_vm2, %v2027_v61, -1e+30  ;;  %v3999_v6 = vpop.f32.mrb[11].mxu0 }
 0x4ce   : > { %v2055_v7 = vsel %vm2039_vm3, %v5104_v4, -inf  ;;  %v2058_v8 = vsel %vm2039_vm3, %v5108_v5, -inf }
 0x4cf   : > { %2056 = vmax.xlane.f32.xlu0 %v2055_v7  ;;  %2059 = vmax.xlane.f32.xlu1 %v2058_v8 }
 0x4d2   : > { %v2015_v9 = vpop.f32.mrb[24].mxu1 }
 0x4d3   : > { %v2028_v10 = vmul.f32 0.088388346, %v2015_v9  ;;  %v4004_v11 = vpop.f32.mrb[25].mxu1 }
 0x4d4   : > { %v2018_v12 = vpop.f32.mrb[26].mxu1 }
 0x4d5   : > { %v4005_v13 = vpop.f32.mrb[27].mxu1  ;;  %v5116_v14 = vsel %vm5071_vm2, %v2028_v10, -1e+30 }
 0x4d6   : > { %v2061_v15 = vsel %vm2039_vm3, %v5116_v14, -inf }
 0x4d7   : > { %2062 = vmax.xlane.f32.xlu0 %v2061_v15 }
 0x504   : > { %1351 = vxpose.xlu0.b32.start.end [1/1] (short) %v5026_v42, 128 }
 0x528   : > { %v2042_v23 = vpop.xlane.xlu0 %2041 }
 0x529   : > { %v2064_v45 = vsub.f32 %v5077_v26, %v2042_v23 }
 0x52b   : > { %v2072_v47 = vmul.f32 1.442695, %v2064_v45 }
 0x530   : > { %v2045_v16 = vpop.xlane.xlu1 %2044 }
 0x531   : > { %v2065_v17 = vsub.f32 %v2032_v33, %v2045_v16 }
 0x533   : > { %v2074_v19 = vmul.f32 1.442695, %v2065_v17 }
 0x535   : > { %4437 = vpow2.f32 %v2074_v19 }
 0x536   : > { %4439 = vpow2.f32 %v2072_v47 }
 0x538   : > { %v2048_v46 = vpop.xlane.xlu1 %2047 }
 0x539   : > { %v2066_v49 = vsub.f32 %v5086_v40, %v2048_v46 }
 0x53b   : > { %v2076_v50 = vmul.f32 1.442695, %v2066_v49 }
 0x53d   : > { %4441 = vpow2.f32 %v2076_v50 }
 0x53f   : > { %v5121_v20 = vpop.eup %4437 }
 0x540   : > { %v2091_v22 = vsel %vm2039_vm3, %v5121_v20, 0.0  ;;  %v5134_v59 = vpop.eup %4439 }
 0x541   : > { %v2088_v60 = vsel %vm2039_vm3, %v5134_v59, 0.0 }
 0x54c   : > { %v2051_v21 = vpop.xlane.xlu0 %2050 }
 0x54d   : > { %v2067_v51 = vsub.f32 %v5092_v48, %v2051_v21  ;;  %v5139_v48 = vpop.eup %4441 }
 0x54e   : > { %v2094_v62 = vsel %vm2039_vm3, %v5139_v48, 0.0 }
 0x54f   : > { %v2078_v53 = vmul.f32 1.442695, %v2067_v51 }
 0x551   : > { %4443 = vpow2.f32 %v2078_v53 }
 0x554   : > { %v2054_v52 = vpop.xlane.xlu1 %2053 }
 0x555   : > { %v2068_v54 = vsub.f32 %v5098_v55, %v2054_v52 }
 0x557   : > { %v2080_v56 = vmul.f32 1.442695, %v2068_v54 }
 0x559   : > { %4445 = vpow2.f32 %v2080_v56 }
 0x55b   : > { %v5144_v63 = vpop.eup %4443 }
 0x55c   : > { %v2057_v24 = vpop.xlane.xlu0 %2056  ;;  %v2060_v58 = vpop.xlane.xlu1 %2059  ;;  %v2097_v1 = vsel %vm2039_vm3, %v5144_v63, 0.0 }
 0x55d   : > { %v2069_v57 = vsub.f32 %v5104_v4, %v2057_v24  ;;  %v2070_v40 = vsub.f32 %v5108_v5, %v2060_v58 }
 0x55f   : > { %v2082_v26 = vmul.f32 1.442695, %v2069_v57  ;;  %v2084_v61 = vmul.f32 1.442695, %v2070_v40 }
 0x561   : > { %4447 = vpow2.f32 %v2082_v26 }
 0x562   : > { %4449 = vpow2.f32 %v2084_v61 }
 0x563   : > { %v5148_v2 = vpop.eup %4445 }
 0x564   : > { %v2063_v27 = vpop.xlane.xlu0 %2062  ;;  %v2100_v4 = vsel %vm2039_vm3, %v5148_v2, 0.0 }
 0x565   : > { %v2071_v55 = vsub.f32 %v5116_v14, %v2063_v27 }
 0x567   : > { %v2086_v0 = vmul.f32 1.442695, %v2071_v55 }
 0x569   : > { %4451 = vpow2.f32 %v2086_v0 }
 0x56b   : > { %v5152_v5 = vpop.eup %4447 }
 0x56c   : > { %v2103_v6 = vsel %vm2039_vm3, %v5152_v5, 0.0  ;;  %v5156_v7 = vpop.eup %4449 }
 0x56d   : > { %2092 = vadd.xlane.f32.xlu0 %v2091_v22  ;;  %v2106_v8 = vsel %vm2039_vm3, %v5156_v7, 0.0 }
 0x573   : > { %v5160_v9 = vpop.eup %4451 }
 0x574   : > { %v2109_v10 = vsel %vm2039_vm3, %v5160_v9, 0.0 }
 0x584   : > { %v1367_v28 = vpop.trf.xlu0 }
 0x585   : > { %1383 = vxpose.xlu1.b32.start [1/2] (short) (narrow) %v1367_v28, 8 }
 0x588   : > { %v1368_v29 = vpop.trf.xlu0 }
 0x589   : > { %1384 = vxpose.xlu1.b32.end [2/2] (short) (narrow) %v1368_v29, 8 }
 0x58c   : > { %v1369_v30 = vpop.trf.xlu0 }
 0x590   : > { %v1370_v42 = vpop.trf.xlu0 }
 0x594   : > { %v1371_v31 = vpop.trf.xlu0 }
 0x595   : > { %1447 = vxpose.xlu1.b32.start [1/2] (short) (narrow) %v1371_v31, 8 }
 0x598   : > { %v1372_v32 = vpop.trf.xlu0 }
 0x599   : > { %1448 = vxpose.xlu1.b32.end [2/2] (short) (narrow) %v1372_v32, 8 }
 0x59a   : > { %1415 = vxpose.xlu0.b32.start [1/2] (short) (narrow) %v1369_v30, 8 }
 0x59c   : > { %v1373_v33 = vpop.trf.xlu0 }
 0x59d   : > { %1479 = vxpose.xlu1.b32.start [1/2] (short) (narrow) %v1373_v33, 8 }
 0x59e   : > { %1416 = vxpose.xlu0.b32.end [2/2] (short) (narrow) %v1370_v42, 8 }
 0x5a0   : > { %v1374_v34 = vpop.trf.xlu0 }
 0x5a1   : > { %1480 = vxpose.xlu1.b32.end [2/2] (short) (narrow) %v1374_v34, 8 }
 0x5a4   : > { %v1375_v35 = vpop.trf.xlu0 }
 0x5a5   : > { %1511 = vxpose.xlu1.b32.start [1/2] (short) (narrow) %v1375_v35, 8 }
 0x5a8   : > { %v1376_v36 = vpop.trf.xlu0 }
 0x5a9   : > { %1512 = vxpose.xlu1.b32.end [2/2] (short) (narrow) %v1376_v36, 8 }
 0x5ac   : > { %v1377_v37 = vpop.trf.xlu0 }
 0x5ad   : > { %1543 = vxpose.xlu1.b32.start [1/2] (short) (narrow) %v1377_v37, 8 }
 0x5b0   : > { %v1378_v38 = vpop.trf.xlu0 }
 0x5b1   : > { %1544 = vxpose.xlu1.b32.end [2/2] (short) (narrow) %v1378_v38, 8 }
 0x5b4   : > { %v5125_v39 = vpop.trf.xlu0 }
 0x5b8   : > { %v5127_v41 = vpop.trf.xlu0 }
 0x5bc   : > { %v1381_v43 = vpop.trf.xlu0 }
 0x5bd   : > { %1607 = vxpose.xlu0.b32.start [1/2] (short) (narrow) %v1381_v43, 8 }
 0x5c0   : > { %v1382_v44 = vpop.trf.xlu0 }
 0x5c1   : > { %1608 = vxpose.xlu0.b32.end [2/2] (short) (narrow) %v1382_v44, 8 }
 0x5d8   : > { %2089 = vadd.xlane.f32.xlu1 %v2088_v60 }
 0x5dc   : > { %2095 = vadd.xlane.f32.xlu1 %v2094_v62 }
 0x5e0   : > { %2098 = vadd.xlane.f32.xlu1 %v2097_v1 }
 0x5e4   : > { %2101 = vadd.xlane.f32.xlu1 %v2100_v4 }
 0x5e8   : > { %2104 = vadd.xlane.f32.xlu1 %v2103_v6 }
 0x5ec   : > { %2107 = vadd.xlane.f32.xlu1 %v2106_v8 }
 0x5f0   : > { %2110 = vadd.xlane.f32.xlu1 %v2109_v10 }
 0x5fa   : > { %v2093_v14 = vpop.xlane.xlu0 %2092 }
 0x5fb   : > { %4453 = vrcp.f32 %v2093_v14 }
 0x605   : > { %v1399_v11 = vpop.trf.xlu1  ;;  %v4454_v16 = vpop.eup %4453 }
 0x606   : > { %v1639_v12 = vpack.c.bf16 %v1399_v11, %v1399_v11  ;;  %v2121_v19 = vmul.f32 %v4454_v16, %v5121_v20 }
 0x608   : > { %v2141_v13 = vsel %vm2139_vm4, %v1639_v12, 0  ;;  %v2129_v27 = vpack.c.bf16 %v2121_v19, %v2121_v19 }
 0x609   : > { %4007 = vmatpush3.bf16.msra.mxu0 %v2141_v13 }
 0x60a   : > { %4018 = vmatprep.subr.bf16.mxu0 %v4701_v3 }
 0x615   : > { %v1463_v15 = vpop.trf.xlu1 }
 0x616   : > { %v1641_v33 = vpack.c.bf16 %v1463_v15, %v1463_v15 }
 0x618   : > { %v2233_v38 = vsel %vm2139_vm4, %v1641_v33, 0 }
 0x61a   : > { %v1431_v17 = vpop.trf.xlu0 }
 0x61b   : > { %v1640_v22 = vpack.c.bf16 %v1431_v17, %v1431_v17 }
 0x61d   : > { %v2187_v23 = vsel %vm2139_vm4, %v1640_v22, 0  ;;  %v1495_v21 = vpop.trf.xlu1 }
 0x61e   : > { %4013 = vmatpush3.bf16.msra.mxu1 %v2187_v23  ;;  %v1642_v24 = vpack.c.bf16 %v1495_v21, %v1495_v21 }
 0x61f   : > { %4024 = vmatprep.subr.bf16.mxu1 %v4701_v3 }
 0x620   : > { %v2279_v28 = vsel %vm2139_vm4, %v1642_v24, 0 }
 0x621   : > { %4015 = vmatmul.mubr.msk.bf16.vlgmr.msra.gmra.mrb[28].mxu1 %vm2039_vm3, %v2129_v27 }
 0x622   : > { %4025 = vmatpush3.bf16.msra.mxu1 %v2279_v28  ;;  %4026 = vmatprep.mubr.msk.bf16.mxu1 %vm4703_vm0, %v4701_v3 }
 0x623   : > { %1575 = vxpose.xlu1.b32.start [1/2] (short) (narrow) %v5125_v39, 8  ;;  %4036 = vmatprep.subr.bf16.mxu1 %v4701_v3 }
 0x625   : > { %v1527_v20 = vpop.trf.xlu1 }
 0x626   : > { %v1643_v44 = vpack.c.bf16 %v1527_v20, %v1527_v20 }
 0x627   : > { %1576 = vxpose.xlu1.b32.end [2/2] (short) (narrow) %v5127_v41, 8 }
 0x628   : > { %v2325_v53 = vsel %vm2139_vm4, %v1643_v44, 0  ;;  %v4349_v44 = vld [vmem:[#allocation7 + $0x10] sm:$0xff]  }
 0x62d   : > { %v1559_v29 = vpop.trf.xlu1 }
 0x62e   : > { %v1644_v45 = vpack.c.bf16 %v1559_v29, %v1559_v29 }
 0x630   : > { %v2371_v54 = vsel %vm2139_vm4, %v1644_v45, 0  ;;  %v4350_v45 = vld [vmem:[#allocation7 + $0x18] sm:$0xff]  }
 0x63d   : > { %v1623_v52 = vpop.trf.xlu0 }
 0x63e   : > { %v1646_v58 = vpack.c.bf16 %v1623_v52, %v1623_v52 }
 0x665   : > { %v2090_v30 = vpop.xlane.xlu1 %2089 }
 0x666   : > { %4455 = vrcp.f32 %v2090_v30 }
 0x669   : > { %v2096_v42 = vpop.xlane.xlu1 %2095 }
 0x66a   : > { %4457 = vrcp.f32 %v2096_v42 }
 0x66d   : > { %v2099_v31 = vpop.xlane.xlu1 %2098 }
 0x66e   : > { %4459 = vrcp.f32 %v2099_v31 }
 0x670   : > { %v4456_v32 = vpop.eup %4455 }
 0x671   : > { %v2120_v34 = vmul.f32 %v4456_v32, %v5134_v59  ;;  %v2102_v35 = vpop.xlane.xlu1 %2101 }
 0x672   : > { %4461 = vrcp.f32 %v2102_v35 }
 0x673   : > { %v2128_v36 = vpack.c.bf16 %v2120_v34, %v2120_v34 }
 0x674   : > { %v4458_v37 = vpop.eup %4457 }
 0x675   : > { %4009 = vmatmul.mubr.msk.bf16.vlgmr.msra.gmra.mrb[12].mxu0 %vm2039_vm3, %v2128_v36  ;;  %v2105_v39 = vpop.xlane.xlu1 %2104  ;;  %v2122_v41 = vmul.f32 %v4458_v37, %v5139_v48  ;;  %v2463_v48 = vsel %vm2139_vm4, %v1646_v58, 0 }
 0x676   : > { %4019 = vmatpush3.bf16.msra.mxu0 %v2233_v38  ;;  %4463 = vrcp.f32 %v2105_v39  ;;  %4020 = vmatprep.mubr.msk.bf16.mxu0 %vm4703_vm0, %v4701_v3 }
 0x677   : > { %4030 = vmatprep.subr.bf16.mxu0 %v4701_v3  ;;  %v2130_v49 = vpack.c.bf16 %v2122_v41, %v2122_v41  ;;  %v4347_v41 = vld [vmem:[#allocation7] sm:$0xff]  }
 0x678   : > { %v4460_v43 = vpop.eup %4459 }
 0x679   : > { %v2123_v46 = vmul.f32 %v4460_v43, %v5144_v63  ;;  %v2108_v47 = vpop.xlane.xlu1 %2107  ;;  %v4348_v43 = vld [vmem:[#allocation7 + $0x8] sm:$0xff]  }
 0x67b   : > { %v2131_v50 = vpack.c.bf16 %v2123_v46, %v2123_v46  ;;  %v4351_v46 = vld [vmem:[#allocation7 + $0x20] sm:$0xff]  }
 0x67c   : > { %v4462_v51 = vpop.eup %4461 }
 0x67d   : > { %4021 = vmatmul.mubr.msk.bf16.vlgmr.msra.gmra.mrb[16].mxu0 %vm2039_vm3, %v2130_v49  ;;  %4027 = vmatmul.mubr.msk.bf16.vlgmr.msra.gmra.mrb[32].mxu1 %vm2039_vm3, %v2131_v50  ;;  %v2111_v56 = vpop.xlane.xlu1 %2110  ;;  %v2124_v57 = vmul.f32 %v4462_v51, %v5148_v2  ;;  %v4353_v49 = vld [vmem:[#allocation7 + $0x30] sm:$0xff]   ;;  %v4354_v50 = vld [vmem:[#allocation7 + $0x38] sm:$0xff]  }
 0x67e   : > { %4031 = vmatpush3.bf16.msra.mxu0 %v2325_v53  ;;  %4037 = vmatpush3.bf16.msra.mxu1 %v2371_v54  ;;  %4465 = vrcp.f32 %v2111_v56 }
 0x67f   : > { %4032 = vmatprep.mubr.msk.bf16.mxu0 %vm4703_vm0, %v4701_v3  ;;  %4038 = vmatprep.mubr.msk.bf16.mxu1 %vm4703_vm0, %v4701_v3  ;;  %v2132_v40 = vpack.c.bf16 %v2124_v57, %v2124_v57  ;;  %4467 = vrcp.f32 %v2108_v47  ;;  %v4352_v47 = vld [vmem:[#allocation7 + $0x28] sm:$0xff]  }
 0x680   : > { %v4464_v59 = vpop.eup %4463  ;;  %4048 = vmatprep.subr.bf16.mxu1 %v4701_v3  ;;  %4042 = vmatprep.subr.bf16.mxu0 %v4701_v3 }
 0x681   : > { %v2125_v26 = vmul.f32 %v4464_v59, %v5152_v5 }
 0x683   : > { %v2133_v60 = vpack.c.bf16 %v2125_v26, %v2125_v26 }
 0x685   : > { %4033 = vmatmul.mubr.msk.bf16.vlgmr.msra.gmra.mrb[20].mxu0 %vm2039_vm3, %v2132_v40  ;;  %4039 = vmatmul.mubr.msk.bf16.vlgmr.msra.gmra.mrb[36].mxu1 %vm2039_vm3, %v2133_v60 }
 0x686   : > { %4049 = vmatpush3.bf16.msra.mxu1 %v2463_v48  ;;  %4050 = vmatprep.mubr.msk.bf16.mxu1 %vm4703_vm0, %v4701_v3 }
 0x687   : > { %4044 = vmatprep.mubr.msk.bf16.mxu0 %vm4703_vm0, %v4701_v3 }
 0x688   : > { %v4466_v61 = vpop.eup %4465 }
 0x689   : > { %v2127_v55 = vmul.f32 %v4466_v61, %v5160_v9  ;;  %v4468_v63 = vpop.eup %4467 }
 0x68a   : > { %v2126_v1 = vmul.f32 %v4468_v63, %v5156_v7 }
 0x68b   : > { %v2135_v62 = vpack.c.bf16 %v2127_v55, %v2127_v55 }
 0x68c   : > { %v2134_v5 = vpack.c.bf16 %v2126_v1, %v2126_v1 }
 0x68d   : > { %4051 = vmatmul.mubr.msk.bf16.vlgmr.msra.gmra.mrb[40].mxu1 %vm2039_vm3, %v2135_v62 }
 0x68e   : > { %3181 = vmatprep.mubr.bf16.mxu1 %v4702_v25 }
 0x6a3   : > { %v1591_v0 = vpop.trf.xlu1 }
 0x6a4   : > { %v1645_v2 = vpack.c.bf16 %v1591_v0, %v1591_v0 }
 0x6a6   : > { %v2417_v4 = vsel %vm2139_vm4, %v1645_v2, 0  ;;  %v3772_v2 = vld [vmem:[%s5300_s5] ss:$0 sm:$0xff] }
 0x6a7   : > { %4043 = vmatpush3.bf16.msra.mxu0 %v2417_v4  ;;  %v4471_v4 = vld [vmem:[%s4988_s15] sm:$0xff] }
 0x6a8   : > { %4054 = vmatprep.subr.bf16.mxu0 %v4701_v3 }
 0x6aa   : > { %4045 = vmatmul.mubr.msk.bf16.vlgmr.msra.gmra.mrb[24].mxu0 %vm2039_vm3, %v2134_v5 }
 0x6ab   : > { %4070 = vmatprep.mubr.msk.bf16.mxu0 %vm4703_vm0, %v4701_v3  ;;  %4055 = vmatpush3.bf16.msra.mxu0 %v4347_v41  ;;  %v4396_v41 = vld [vmem:[#allocation8 + $0xcc] ss:$16 sps:$4 sm:$0xff]  }
 0x6ac   : > { %4056 = vmatprep.subr.bf16.mxu0 %v4701_v3 }
 0x6af   : > { %4057 = vmatpush3.bf16.msra.mxu0 %v4348_v43  ;;  %v4391_v43 = vld [vmem:[#allocation8 + $0xc0] ss:$16 sps:$4 sm:$0xff]  }
 0x6b0   : > { %4058 = vmatprep.subr.bf16.mxu0 %v4701_v3 }
 0x6b3   : > { %4059 = vmatpush3.bf16.msra.mxu0 %v4349_v44  ;;  %v4394_v44 = vld [vmem:[#allocation8 + $0xc8] ss:$16 sps:$4 sm:$0xff]  }
 0x6b4   : > { %4060 = vmatprep.subr.bf16.mxu0 %v4701_v3 }
 0x6b7   : > { %4061 = vmatpush3.bf16.msra.mxu0 %v4350_v45  ;;  %v4399_v45 = vld [vmem:[#allocation8 + $0xe4] ss:$16 sps:$4 sm:$0xff]  }
 0x6b8   : > { %4062 = vmatprep.subr.bf16.mxu0 %v4701_v3 }
 0x6bb   : > { %4063 = vmatpush3.bf16.msra.mxu0 %v4351_v46  ;;  %v4402_v46 = vld [vmem:[#allocation8 + $0xec] ss:$16 sps:$4 sm:$0xff]  }
 0x6bc   : > { %4064 = vmatprep.subr.bf16.mxu0 %v4701_v3 }
 0x6bf   : > { %4065 = vmatpush3.bf16.msra.mxu0 %v4352_v47  ;;  %v4397_v47 = vld [vmem:[#allocation8 + $0xe0] ss:$16 sps:$4 sm:$0xff]  }
 0x6c0   : > { %4066 = vmatprep.subr.bf16.mxu0 %v4701_v3 }
 0x6c3   : > { %4067 = vmatpush3.bf16.msra.mxu0 %v4353_v49  ;;  %v4400_v49 = vld [vmem:[#allocation8 + $0xe8] ss:$16 sps:$4 sm:$0xff]  }
 0x6c4   : > { %4068 = vmatprep.subr.bf16.mxu0 %v4701_v3 }
 0x6c7   : > { %4069 = vmatpush3.bf16.msra.mxu0 %v4354_v50  ;;  %v4403_v50 = vld [vmem:[#allocation10 + $0x40] sm:$0xff]  }
 0x6f4   : > { %v2223_v6 = vpop.f32.mrb[28].mxu1 }
 0x6f5   : > { %2537 = vxpose.xlu0.b32.start.end [1/1] (short) (narrow) %v2223_v6, 16  ;;  %v4016_v8 = vpop.f32.mrb[29].mxu1 }
 0x6f6   : > { %v2226_v9 = vpop.f32.mrb[30].mxu1 }
 0x6f7   : > { %v4017_v10 = vpop.f32.mrb[31].mxu1 }
 0x748   : > { %v2177_v11 = vpop.f32.mrb[12].mxu0 }
 0x749   : > { %2505 = vxpose.xlu1.b32.start.end [1/1] (short) (narrow) %v2177_v11, 16  ;;  %v4010_v7 = vpop.f32.mrb[13].mxu0  ;;  %v4355_v11 = vld [vmem:[#allocation8] ss:$16 sps:$4 sm:$0xff]  }
 0x74a   : > { %v2180_v12 = vpop.f32.mrb[14].mxu0  ;;  %v4357_v7 = vld [vmem:[#allocation8 + $0x4] ss:$16 sps:$4 sm:$0xff]  }
 0x74b   : > { %v4011_v13 = vpop.f32.mrb[15].mxu0  ;;  %v4358_v12 = vld [vmem:[#allocation8 + $0x8] ss:$16 sps:$4 sm:$0xff]   ;;  %3149 = vmatprep.subr.bf16.mxu1 %v4357_v7  ;;  %v4420_v7 = vld [vmem:[#allocation10 + $0xe0] sm:$0xff]  }
 0x74c   : > { %v4360_v13 = vld [vmem:[#allocation8 + $0xc] ss:$16 sps:$4 sm:$0xff]   ;;  %3150 = vmatpush1.bf16.msra.mxu1 %v4355_v11  ;;  %v4419_v11 = vld [vmem:[#allocation10 + $0x60] sm:$0xff]  }
 0x74d   : > { %3190 = vmatprep.subr.bf16.mxu0 %v4360_v13  ;;  %v4422_v13 = vld [vmem:[#allocation10 + $0xa0] sm:$0xff]  }
 0x750   : > { %v2269_v14 = vpop.f32.mrb[16].mxu0  ;;  %v2315_v15 = vpop.f32.mrb[32].mxu1 }
 0x751   : > { %2601 = vxpose.xlu0.b32.start.end [1/1] (short) (narrow) %v2315_v15, 16  ;;  %v4028_v16 = vpop.f32.mrb[33].mxu1  ;;  %2569 = vxpose.xlu1.b32.start.end [1/1] (short) (narrow) %v2269_v14, 16  ;;  %v4022_v17 = vpop.f32.mrb[17].mxu0  ;;  %v4363_v14 = vld [vmem:[#allocation8 + $0x24] ss:$16 sps:$4 sm:$0xff]  }
 0x752   : > { %v2272_v19 = vpop.f32.mrb[18].mxu0  ;;  %v2318_v22 = vpop.f32.mrb[34].mxu1  ;;  %v4361_v15 = vld [vmem:[#allocation8 + $0x20] ss:$16 sps:$4 sm:$0xff]   ;;  %3151 = vmatprep.subr.bf16.mxu1 %v4363_v14  ;;  %v4364_v16 = vld [vmem:[#allocation8 + $0x28] ss:$16 sps:$4 sm:$0xff]  }
 0x753   : > { %v4023_v23 = vpop.f32.mrb[19].mxu0  ;;  %v4029_v21 = vpop.f32.mrb[35].mxu1  ;;  %v4369_v17 = vld [vmem:[#allocation8 + $0x44] ss:$16 sps:$4 sm:$0xff]   ;;  %v4372_v19 = vld [vmem:[#allocation8 + $0x4c] ss:$16 sps:$4 sm:$0xff]   ;;  %3152 = vmatpush1.bf16.msra.mxu1 %v4361_v15 }
 0x754   : > { %v4367_v22 = vld [vmem:[#allocation8 + $0x40] ss:$16 sps:$4 sm:$0xff]   ;;  %3153 = vmatprep.subr.bf16.mxu1 %v4369_v17  ;;  %v4370_v23 = vld [vmem:[#allocation8 + $0x48] ss:$16 sps:$4 sm:$0xff]  }
 0x755   : > { %v4423_v14 = vld [vmem:[#allocation10 + $0x68] sm:$0xff]   ;;  %v4427_v17 = vld [vmem:[#allocation10 + $0x70] sm:$0xff]  }
 0x756   : > { %v4425_v15 = vld [vmem:[#allocation10 + $0x28] sm:$0xff]  }
 0x757   : > { %3154 = vmatpush1.bf16.msra.mxu1 %v4367_v22  ;;  %v4429_v22 = vld [vmem:[#allocation10 + $0x30] sm:$0xff]  }
 0x758   : > { %v2361_v24 = vpop.f32.mrb[20].mxu0  ;;  %v2407_v27 = vpop.f32.mrb[36].mxu1 }
 0x759   : > { %2665 = vxpose.xlu0.b32.start.end [1/1] (short) (narrow) %v2407_v27, 16  ;;  %v4040_v28 = vpop.f32.mrb[37].mxu1  ;;  %2633 = vxpose.xlu1.b32.start.end [1/1] (short) (narrow) %v2361_v24, 16  ;;  %v4034_v20 = vpop.f32.mrb[21].mxu0 }
 0x75a   : > { %v2364_v29 = vpop.f32.mrb[22].mxu0  ;;  %v2410_v30 = vpop.f32.mrb[38].mxu1  ;;  %v4375_v20 = vld [vmem:[#allocation8 + $0x64] ss:$16 sps:$4 sm:$0xff]  }
 0x75b   : > { %v4035_v42 = vpop.f32.mrb[23].mxu0  ;;  %v4041_v31 = vpop.f32.mrb[39].mxu1  ;;  %v4378_v29 = vld [vmem:[#allocation8 + $0x6c] ss:$16 sps:$4 sm:$0xff]   ;;  %v4373_v30 = vld [vmem:[#allocation8 + $0x60] ss:$16 sps:$4 sm:$0xff]   ;;  %3155 = vmatprep.subr.bf16.mxu1 %v4375_v20 }
 0x75c   : > { %v4376_v42 = vld [vmem:[#allocation8 + $0x68] ss:$16 sps:$4 sm:$0xff]   ;;  %3156 = vmatpush1.bf16.msra.mxu1 %v4373_v30  ;;  %v4381_v31 = vld [vmem:[#allocation8 + $0x84] ss:$16 sps:$4 sm:$0xff]   ;;  %v2971_v20 = vsub.s32 0, %v5068_v18 }
 0x75d   : > { %3157 = vmatprep.subr.bf16.mxu1 %v4381_v31  ;;  %v2967_v30 = vld [vmem:[%s5335_s30] sm:$0xf]  ;;  %v2983_v31 = vsub.s32 3, %v5068_v18  ;;  %s4614_s30 = scalar_lea.vmem %s5253_s11, 128 }
 0x75e   : > { %p4615_p6 = scmp.ne.s32.totalorder %s5253_s11, %s4614_s30  ;;  %p4622_p1 = scmp.lt.s32.totalorder %s4620_s7, %s4614_s30 }
 0x760   : > { %v2499_v32 = vpop.f32.mrb[40].mxu1  ;;  %p4616_p2 = pnand %p4615_p6, %p5338_p0  ;;  %p4623_p11 = por %p4622_p1, %p4621_p10 }
 0x761   : > { %2729 = vxpose.xlu0.b32.start.end [1/1] (short) (narrow) %v2499_v32, 16  ;;  %v4052_v33 = vpop.f32.mrb[41].mxu1  ;;  %v4384_v32 = vld [vmem:[#allocation8 + $0x8c] ss:$16 sps:$4 sm:$0xff]  }
 0x762   : > { %v2502_v34 = vpop.f32.mrb[42].mxu1  ;;  %v4379_v33 = vld [vmem:[#allocation8 + $0x80] ss:$16 sps:$4 sm:$0xff]   ;;  %p4617_p5 = pneg %p4616_p2 }
 0x763   : > { %v4053_v35 = vpop.f32.mrb[43].mxu1  ;;  %v4382_v34 = vld [vmem:[#allocation8 + $0x88] ss:$16 sps:$4 sm:$0xff]   ;;  %3158 = vmatpush1.bf16.msra.mxu1 %v4379_v33 }
 0x764   : > { %v4387_v35 = vld [vmem:[#allocation8 + $0xa4] ss:$16 sps:$4 sm:$0xff]   ;;  %p4624_p12 = pnand %p4623_p11, %p4617_p5 }
 0x765   : > { %3159 = vmatprep.subr.bf16.mxu1 %v4387_v35  ;;  %v2984_v35 = vrot.slane %v2967_v30, %v2983_v31 }
 0x775   : > { %v2553_v53 = vpop.trf.xlu0 }
 0x779   : > { %v2554_v54 = vpop.trf.xlu0 }
 0x77d   : > { %v2453_v36 = vpop.f32.mrb[24].mxu0 }
 0x77e   : > { %2697 = vxpose.xlu1.b32.start.end [1/1] (short) (narrow) %v2453_v36, 16  ;;  %v4046_v37 = vpop.f32.mrb[25].mxu0  ;;  %v4390_v36 = vld [vmem:[#allocation8 + $0xac] ss:$16 sps:$4 sm:$0xff]  }
 0x77f   : > { %v2456_v38 = vpop.f32.mrb[26].mxu0  ;;  %v4385_v37 = vld [vmem:[#allocation8 + $0xa0] ss:$16 sps:$4 sm:$0xff]  }
 0x780   : > { %v4047_v39 = vpop.f32.mrb[27].mxu0  ;;  %v4388_v38 = vld [vmem:[#allocation8 + $0xa8] ss:$16 sps:$4 sm:$0xff]   ;;  %3160 = vmatpush1.bf16.msra.mxu1 %v4385_v37 }
 0x781   : > { %v4393_v39 = vld [vmem:[#allocation8 + $0xc4] ss:$16 sps:$4 sm:$0xff]  }
 0x782   : > { %3161 = vmatprep.subr.bf16.mxu1 %v4393_v39 }
 0x784   : > { %3162 = vmatpush1.bf16.msra.mxu1 %v4391_v43 }
 0x785   : > { %3163 = vmatprep.subr.bf16.mxu1 %v4399_v45 }
 0x788   : > { %3164 = vmatpush1.bf16.msra.mxu1 %v4397_v47 }
 0x789   : > { %3894 = vmatprep.subr.bf16.mxu1 %v4403_v50 }
 0x7c9   : > { %v2521_v51 = vpop.trf.xlu1 }
 0x7ca   : > { %2761 = vxpose.xlu1.b32.start [1/16] (narrow) %v2521_v51, 8  ;;  %v4404_v51 = vld [vmem:[#allocation10 + $0xc0] sm:$0xff]  }
 0x7cd   : > { %v2522_v52 = vpop.trf.xlu1 }
 0x7ce   : > { %2762 = vxpose.xlu1.b32.cont [2/16] (narrow) %v2522_v52, 8 }
 0x7d1   : > { %v2585_v56 = vpop.trf.xlu1  ;;  %v2617_v58 = vpop.trf.xlu0 }
 0x7d2   : > { %2763 = vxpose.xlu1.b32.cont [3/16] (narrow) %v2553_v53, 8 }
 0x7d5   : > { %v2586_v57 = vpop.trf.xlu1  ;;  %v2618_v59 = vpop.trf.xlu0 }
 0x7d6   : > { %2764 = vxpose.xlu1.b32.cont [4/16] (narrow) %v2554_v54, 8 }
 0x7d9   : > { %v2649_v26 = vpop.trf.xlu1  ;;  %v2681_v40 = vpop.trf.xlu0 }
 0x7da   : > { %2765 = vxpose.xlu1.b32.cont [5/16] (narrow) %v2585_v56, 8 }
 0x7dd   : > { %v2650_v3 = vpop.trf.xlu1  ;;  %v2682_v60 = vpop.trf.xlu0 }
 0x7de   : > { %2766 = vxpose.xlu1.b32.cont [6/16] (narrow) %v2586_v57, 8  ;;  %v3773_v57 = vld [vmem:[%s5301_s6] ss:$0 sm:$0xff] }
 0x7e1   : > { %v2745_v55 = vpop.trf.xlu0 }
 0x7e2   : > { %2767 = vxpose.xlu1.b32.cont [7/16] (narrow) %v2617_v58, 8 }
 0x7e5   : > { %v2746_v62 = vpop.trf.xlu0 }
 0x7e6   : > { %2768 = vxpose.xlu1.b32.cont [8/16] (narrow) %v2618_v59, 8  ;;  %v3774_v59 = vld [vmem:[%s5334_s20] ss:$0 sm:$0xff]  ;;  %s5337_s20 = sld [smem:[#allocation20_spill]] }
 0x7ea   : > { %2769 = vxpose.xlu1.b32.cont [9/16] (narrow) %v2649_v26, 8 }
 0x7ec   : > { %s5251_s15 = scalar_lea.hbm %s5337_s20, %s3841_s18 }
 0x7ee   : > { %2770 = vxpose.xlu1.b32.cont [10/16] (narrow) %v2650_v3, 8 }
 0x7f2   : > { %2771 = vxpose.xlu1.b32.cont [11/16] (narrow) %v2681_v40, 8  ;;  %v4405_v40 = vld [vmem:[#allocation10] sm:$0xff]  }
 0x7f6   : > { %2772 = vxpose.xlu1.b32.cont [12/16] (narrow) %v2682_v60, 8  ;;  %v4406_v60 = vld [vmem:[#allocation10 + $0x80] sm:$0xff]  }
 0x7fe   : > { %v2713_v48 = vpop.trf.xlu1 }
 0x7ff   : > { %2773 = vxpose.xlu1.b32.cont [13/16] (narrow) %v2713_v48, 8 }
 0x802   : > { %v2714_v61 = vpop.trf.xlu1 }
 0x803   : > { %2774 = vxpose.xlu1.b32.cont [14/16] (narrow) %v2714_v61, 8  ;;  %v4407_v61 = vld [vmem:[#allocation10 + $0x48] sm:$0xff]  }
 0x807   : > { %2775 = vxpose.xlu1.b32.cont [15/16] (narrow) %v2745_v55, 8  ;;  %v4408_v55 = vld [vmem:[#allocation10 + $0xc8] sm:$0xff]  }
 0x80b   : > { %2776 = vxpose.xlu1.b32.end [16/16] (narrow) %v2746_v62, 8  ;;  %v4409_v62 = vld [vmem:[#allocation10 + $0x8] sm:$0xff]  }
 0x84f   : > { %v2777_v63 = vpop.trf.xlu1 }
 0x850   : > { %v2793_v0 = vpack.c.bf16 %v2777_v63, %v2777_v63  ;;  %v4410_v63 = vld [vmem:[#allocation10 + $0x88] sm:$0xff]  }
 0x852   : > { %4071 = vmatmul.mubr.bf16.vlgmr.msra.gmra.mrb[28].mxu0 %v2793_v0  ;;  %v4411_v0 = vld [vmem:[#allocation10 + $0x50] sm:$0xff]  }
 0x853   : > { %3222 = vmatprep.mubr.bf16.mxu0 %v4702_v25  ;;  %v4366_v25 = vld [vmem:[#allocation8 + $0x2c] ss:$16 sps:$4 sm:$0xff]   ;;  %3191 = vmatpush1.bf16.msra.mxu0 %v4358_v12  ;;  %v4421_v12 = vld [vmem:[#allocation10 + $0x20] sm:$0xff]  }
 0x854   : > { %3192 = vmatprep.subr.bf16.mxu0 %v4366_v25  ;;  %v4424_v25 = vld [vmem:[#allocation10 + $0xe8] sm:$0xff]  }
 0x857   : > { %3193 = vmatpush1.bf16.msra.mxu0 %v4364_v16  ;;  %v4426_v16 = vld [vmem:[#allocation10 + $0xa8] sm:$0xff]  }
 0x858   : > { %3194 = vmatprep.subr.bf16.mxu0 %v4372_v19  ;;  %v4428_v19 = vld [vmem:[#allocation10 + $0xf0] sm:$0xff]  }
 0x85b   : > { %3195 = vmatpush1.bf16.msra.mxu0 %v4370_v23  ;;  %v4430_v23 = vld [vmem:[#allocation10 + $0xb0] sm:$0xff]  }
 0x85c   : > { %3196 = vmatprep.subr.bf16.mxu0 %v4378_v29  ;;  %v2979_v29 = vsub.s32 2, %v5068_v18 }
 0x85e   : > { %v2980_v33 = vrot.slane %v2967_v30, %v2979_v29 }
 0x85f   : > { %3197 = vmatpush1.bf16.msra.mxu0 %v4376_v42  ;;  %v2975_v42 = vsub.s32 1, %v5068_v18 }
 0x860   : > { %3198 = vmatprep.subr.bf16.mxu0 %v4384_v32  ;;  %v2972_v32 = vrot.slane %v2967_v30, %v2971_v20 }
 0x863   : > { %3199 = vmatpush1.bf16.msra.mxu0 %v4382_v34  ;;  %v2976_v34 = vrot.slane %v2967_v30, %v2975_v42 }
 0x864   : > { %3200 = vmatprep.subr.bf16.mxu0 %v4390_v36 }
 0x867   : > { %3201 = vmatpush1.bf16.msra.mxu0 %v4388_v38 }
 0x868   : > { %3202 = vmatprep.subr.bf16.mxu0 %v4396_v41 }
 0x86b   : > { %3203 = vmatpush1.bf16.msra.mxu0 %v4394_v44 }
 0x86c   : > { %3204 = vmatprep.subr.bf16.mxu0 %v4402_v46 }
 0x86f   : > { %3205 = vmatpush1.bf16.msra.mxu0 %v4400_v49 }
 0x870   : > { %3916 = vmatprep.subr.bf16.mxu0 %v4404_v51 }
 0x925   : > { %v2892_v1 = vpop.f32.mrb[28].mxu0 }
 0x926   : > { %v2898_v5 = vadd.f32 %v4471_v4, %v2892_v1  ;;  %v4072_v6 = vpop.f32.mrb[29].mxu0  ;;  %v4412_v1 = vld [vmem:[#allocation10 + $0xd0] sm:$0xff]  }
 0x927   : > { %v2895_v8 = vpop.f32.mrb[30].mxu0  ;;  %v4414_v4 = vld [vmem:[#allocation10 + $0x90] sm:$0xff]   ;;  %v4416_v6 = vld [vmem:[#allocation10 + $0xd8] sm:$0xff]  }
 0x928   : > { %v5224_v9 = vadd.f32 %v3772_v2, %v2898_v5  ;;  %v4073_v10 = vpop.f32.mrb[31].mxu0  ;;  %v4413_v2 = vld [vmem:[#allocation10 + $0x10] sm:$0xff]   ;;  %v4415_v5 = vld [vmem:[#allocation10 + $0x58] sm:$0xff]  }
 0x929   : > { %v4417_v8 = vld [vmem:[#allocation10 + $0x18] sm:$0xff]  }
 0x92a   : > { %2909 = vadd.xlane.f32.xlu0 %v5224_v9  ;;  %v4418_v10 = vld [vmem:[#allocation10 + $0x98] sm:$0xff]  }
 0x9b7   : > { %v2910_v21 = vpop.xlane.xlu0 %2909 }
 0x9b8   : > { %v2911_v24 = vmul.f32 0.0078125, %v2910_v21  ;;  %v4431_v21 = vld [vmem:[#allocation10 + $0x78] sm:$0xff]  }
 0x9ba   : > { %v2912_v27 = vsub.f32 %v5224_v9, %v2911_v24  ;;  %v4432_v24 = vld [vmem:[#allocation10 + $0xf8] sm:$0xff]  }
 0x9bc   : > { %v2913_v28 = vmul.f32 %v2912_v27, %v2912_v27 }
 0x9be   : > { %2914 = vadd.xlane.f32.xlu0 %v2913_v28  ;;  %v4434_v28 = vld [vmem:[#allocation10 + $0xb8] sm:$0xff]  }
 0xa4b   : > { %v2915_v52 = vpop.xlane.xlu0 %2914 }
 0xa4c   : > { %v2916_v53 = vmul.f32 0.0078125, %v2915_v52 }
 0xa4e   : > { %v2917_v54 = vadd.f32 1e-05, %v2916_v53 }
 0xa50   : > { %4469 = vrsqrt.f32 %v2917_v54 }
 0xa5a   : > { %v4470_v56 = vpop.eup %4469 }
 0xa5b   : > { %v2919_v58 = vmul.f32 %v4470_v56, %v2912_v27  ;;  %v4433_v27 = vld [vmem:[#allocation10 + $0x38] sm:$0xff]  }
 0xa5d   : > { %v2926_v26 = vmul.f32 %v3773_v57, %v2919_v58 }
 0xa5f   : > { %v2933_v3 = vadd.f32 %v3774_v59, %v2926_v26 }
 0xa61   : > { %v2934_v48 = vpack.c.bf16 %v2933_v3, %v2933_v3  ;;  %v3807_v3 = vld [vmem:[%s5336_s12] ss:$0 sm:$0xff] }
 0xa63   : > { %3182 = vmatmul.mubr.bf16.vlgmr.msra.gmra.mrb[44].mxu1 %v2934_v48  ;;  %3223 = vmatmul.mubr.bf16.vlgmr.msra.gmra.mrb[32].mxu0 %v2934_v48 }
 0xa64   : > { %3895 = vmatpush3.bf16.msra.mxu1 %v4405_v40  ;;  %3917 = vmatpush3.bf16.msra.mxu0 %v4406_v60 }
 0xa65   : > { %3896 = vmatprep.subr.bf16.mxu1 %v4407_v61  ;;  %3918 = vmatprep.subr.bf16.mxu0 %v4408_v55 }
 0xa68   : > { %3897 = vmatpush3.bf16.msra.mxu1 %v4409_v62  ;;  %3919 = vmatpush3.bf16.msra.mxu0 %v4410_v63 }
 0xa69   : > { %3898 = vmatprep.subr.bf16.mxu1 %v4411_v0  ;;  %3920 = vmatprep.subr.bf16.mxu0 %v4412_v1 }
 0xa6c   : > { %3899 = vmatpush3.bf16.msra.mxu1 %v4413_v2  ;;  %3921 = vmatpush3.bf16.msra.mxu0 %v4414_v4 }
 0xa6d   : > { %3900 = vmatprep.subr.bf16.mxu1 %v4415_v5  ;;  %3922 = vmatprep.subr.bf16.mxu0 %v4416_v6 }
 0xa70   : > { %3901 = vmatpush3.bf16.msra.mxu1 %v4417_v8  ;;  %3923 = vmatpush3.bf16.msra.mxu0 %v4418_v10 }
 0xa71   : > { %3902 = vmatprep.subr.bf16.mxu1 %v4419_v11  ;;  %3924 = vmatprep.subr.bf16.mxu0 %v4420_v7 }
 0xa74   : > { %3903 = vmatpush3.bf16.msra.mxu1 %v4421_v12  ;;  %3925 = vmatpush3.bf16.msra.mxu0 %v4422_v13 }
 0xa75   : > { %3904 = vmatprep.subr.bf16.mxu1 %v4423_v14  ;;  %3926 = vmatprep.subr.bf16.mxu0 %v4424_v25 }
 0xa78   : > { %3905 = vmatpush3.bf16.msra.mxu1 %v4425_v15  ;;  %3927 = vmatpush3.bf16.msra.mxu0 %v4426_v16 }
 0xa79   : > { %3906 = vmatprep.subr.bf16.mxu1 %v4427_v17  ;;  %3928 = vmatprep.subr.bf16.mxu0 %v4428_v19 }
 0xa7c   : > { %3907 = vmatpush3.bf16.msra.mxu1 %v4429_v22  ;;  %3929 = vmatpush3.bf16.msra.mxu0 %v4430_v23 }
 0xa7d   : > { %3908 = vmatprep.subr.bf16.mxu1 %v4431_v21  ;;  %3930 = vmatprep.subr.bf16.mxu0 %v4432_v24 }
 0xa80   : > { %3909 = vmatpush3.bf16.msra.mxu1 %v4433_v27  ;;  %3931 = vmatpush3.bf16.msra.mxu0 %v4434_v28 }
 0xb36   : > { %v3183_v36 = vpop.f32.mrb[44].mxu1  ;;  %v3224_v37 = vpop.f32.mrb[32].mxu0 }
 0xb37   : > { %v3184_v38 = vadd.f32 %v3183_v36, %v2972_v32  ;;  %v3225_v39 = vadd.f32 %v3224_v37, %v2980_v33  ;;  %v3185_v41 = vpop.f32.mrb[45].mxu1  ;;  %v3226_v43 = vpop.f32.mrb[33].mxu0 }
 0xb38   : > { %v3186_v44 = vadd.f32 %v3185_v41, %v2976_v34  ;;  %v3227_v45 = vadd.f32 %v3226_v43, %v2984_v35  ;;  %v3187_v46 = vpop.f32.mrb[46].mxu1  ;;  %v3228_v47 = vpop.f32.mrb[34].mxu0 }
 0xb39   : > { %v3231_v49 = vmax.f32 %v3184_v38, 0.0  ;;  %v3233_v50 = vmax.f32 %v3225_v39, 0.0  ;;  %v3188_v51 = vpop.f32.mrb[47].mxu1  ;;  %v3229_v52 = vpop.f32.mrb[35].mxu0 }
 0xb3a   : > { %v3232_v53 = vmax.f32 %v3186_v44, 0.0  ;;  %v3234_v18 = vmax.f32 %v3227_v45, 0.0 }
 0xb3b   : > { %v3235_v57 = vpack.c.bf16 %v3231_v49, %v3231_v49  ;;  %v3237_v58 = vpack.c.bf16 %v3233_v50, %v3233_v50 }
 0xb3c   : > { %v3236_v54 = vpack.c.bf16 %v3232_v53, %v3232_v53  ;;  %v3238_v56 = vpack.c.bf16 %v3234_v18, %v3234_v18 }
 0xb3e   : > { %3534 = vmatprep.mubr.bf16.mxu1 %v3236_v54  ;;  %3574 = vmatprep.mubr.bf16.mxu0 %v3238_v56 }
 0xb3f   : > { %3535 = vmatmul.mubr.bf16.vlgmr.msra.gmra.mrb[48].mxu1 %v3235_v57  ;;  %3575 = vmatmul.mubr.bf16.vlgmr.msra.gmra.mrb[36].mxu0 %v3237_v58 }
 0xc12   : > { %v3910_v59 = vpop.f32.mrb[48].mxu1  ;;  %v3932_v26 = vpop.f32.mrb[36].mxu0 }
 0xc13   : > { %v3911_v40 = vpop.f32.mrb[49].mxu1  ;;  %v3933_v60 = vpop.f32.mrb[37].mxu0 }
 0xc14   : > { %v3912_v48 = vadd.f32 %v3911_v40, %v3910_v59  ;;  %v3934_v61 = vadd.f32 %v3933_v60, %v3932_v26  ;;  %v3913_v55 = vpop.f32.mrb[50].mxu1  ;;  %v3935_v62 = vpop.f32.mrb[38].mxu0 }
 0xc15   : > { %v3914_v63 = vpop.f32.mrb[51].mxu1  ;;  %v3936_v0 = vpop.f32.mrb[39].mxu0 }
 0xc16   : > { %v3537_v1 = vadd.f32 %v3912_v48, %v3807_v3 }
 0xc18   : > { %v3577_v2 = vadd.f32 %v3934_v61, %v3537_v1 }
 0xc1a   : > { %v3582_v4 = vadd.f32 %v3577_v2, %v5224_v9 }
 0xc1c   : > { %3583 = vst [vmem:[%s486_s9] sm:$0xff] %v3582_v4 }
 0xc1d   : > { %4627 = shalt.err (!%p4624_p12)
}
 0xc1e   : > { %s4628_s3 = scalar_lea.hbm %s5251_s15, 128  ;;  %s4632_s18 = scalar_lea.hbm %s5337_s20, 256 }
 0xc1f   : > { %p4629_p13 = scmp.ne.s32.totalorder %s5251_s15, %s4628_s3  ;;  %p4633_p9 = scmp.lt.u32.totalorder %s5251_s15, %s5337_s20 }
 0xc20   : > { %p4634_p4 = scmp.lt.u32.totalorder %s4632_s18, %s4628_s3  ;;  %p4636_p6 = scmp.lt.u32.totalorder %s4628_s3, %s5251_s15 }
 0xc21   : > { %p4630_p3 = pnand %p4629_p13, %p5338_p0 }
 0xc22   : > { %p4635_p8 = por %p4634_p4, %p4633_p9 }
 0xc23   : > { %p4631_p7 = pneg %p4630_p3 }
 0xc24   : > { %p4637_p2 = por %p4636_p6, %p4635_p8 }
 0xc26   : > { %p4638_p5 = pnand %p4637_p2, %p4631_p7 }
 0xc28   : > { %4641 = shalt.err (!%p4638_p5)
}
 0xc29   : > { %4092 = dma.vmem_to_hbm [thread:$0]  (%p5338_p0), %s5253_s11, 128, %s5251_s15, %s3585_s28  }
 0xc2a PF: > { %s3610_s16 = sand.u32 1, %s4676_s21   ;;  %p5339_p10 = scmp.ne.s32.totalorder %s5325_s29, 0 }
 0xc2b   : > { %p5340_p1 = scmp.ge.s32.totalorder %s4688_s24, 2  ;;  %s3611_s30 = scalar_lea.sflag [#allocation4], %s3610_s16 }
 0xc2d   : > { %p4112_p11 = pnand %p5340_p1, %p5339_p10 }
 0xc2f   : > { %4671 = dma.done.wait (!%p4112_p11), %s3611_s30, 128  }
 0xc30   : > { %4673 = vsyncadd (!%p4112_p11), %s3611_s30, 4294967168  ;;  %p27_p12 = scmp.ge.s32.totalorder %s4906_s13, 4   ;;  %s5341_s21 = smov %s4680_s22 }
 0xc31   : > { %s5342_s22 = smov %s4684_s23  ;;  %s5343_s23 = smov %s4917_s19 }
 0xc32   : > { %s5344_s24 = smov %s4906_s13  ;;  %29 = sbr.rel (!%p27_p12) target bundleno = 13 (0xd), region = 129 }
 0xc39   :  { %3616 = vsyncpa [#allocation3], 1 }
 0xc3a   :  { %3618 = vsyncpa [#allocation3 + $0x1], 1 }
 0xc3b   :  { %3619 = vsyncpa [#allocation6], 1 }
 0xc3c   :  { %3620 = vsyncpa [#allocation9], 1 }
 0xc3d   :  { %3621 = vsyncpa [#allocation4], 1 }
 0xc3e   :  { %3623 = vsyncpa [#allocation4 + $0x1], 1 }

</bundles_post_ra>
